<compile_context>
chip_gen: v7x
topology: tpu7x:2x2x1
jax: 0.10.0
libtpu: 0.0.40
codegen_flags: <defaults>
</compile_context>

<pallas_src>
import functools

import jax
import jax.numpy as jnp
from jax.experimental import pallas as pl
from jax.experimental.pallas import tpu as pltpu


def _attn_kernel(x_ref, wq_ref, bq_ref, wkv_ref, bkv_ref, wo_ref, bo_ref,
                 o_ref, k_scr, v_scr, *, n_head, per_head_dim, scale, tq, tkv):
    """Grid = (B, T // tq).

    x_ref:   (1, T, E)  bf16  resident per batch element (block index depends on b only)
    wq_ref:  (E, E)  bf16     bq_ref:  (1, E)  f32
    wkv_ref: (E, 2E) bf16     bkv_ref: (1, 2E) f32
    wo_ref:  (E, E)  bf16     bo_ref:  (1, E)  f32
    o_ref:   (1, tq, E) f32
    k_scr:   (H, Dh, T) bf16  per-head K, pre-transposed, filled once per batch element
    v_scr:   (H, T, Dh) bf16  per-head V, filled once per batch element
    """
    H = n_head
    Dh = per_head_dim
    E = H * Dh
    T = x_ref.shape[1]
    qi = pl.program_id(1)

    # --- K/V projection: once per batch element, chunked over T (bounded live range). ---
    @pl.when(qi == 0)
    def _():
        for c in range(T // tkv):
            r0 = c * tkv
            rows = x_ref[0, r0:r0 + tkv, :]                                  # (tkv, E) bf16
            kv = jnp.dot(rows, wkv_ref[...],
                         preferred_element_type=jnp.float32) + bkv_ref[...]  # (tkv, 2E) f32
            # Lane-aligned K / V split; transpose K once per chunk (not per head).
            kT = kv[:, :E].T.astype(jnp.bfloat16)                            # (E, tkv)
            vC = kv[:, E:].astype(jnp.bfloat16)                              # (tkv, E)
            for h in range(H):
                lo = h * Dh
                k_scr[h, :, r0:r0 + tkv] = kT[lo:lo + Dh, :]
                v_scr[h, r0:r0 + tkv, :] = vC[:, lo:lo + Dh]

    # --- Q projection for this query tile; fold 1/sqrt(Dh) into q once. ---
    q0 = pl.multiple_of(qi * tq, tq)
    xq = x_ref[0, pl.ds(q0, tq), :]                                          # (tq, E) bf16
    q = (jnp.dot(xq, wq_ref[...], preferred_element_type=jnp.float32)
         + bq_ref[...]) * scale
    q = q.astype(jnp.bfloat16)                                               # (tq, E)

    # --- Per-head attention; standard (tq,Dh)@(Dh,T) contraction, lane-dense scores. ---
    ctx_parts = []
    for h in range(H):
        lo = h * Dh
        qh = q[:, lo:lo + Dh]                                                # (tq, Dh)
        s = jnp.dot(qh, k_scr[h], preferred_element_type=jnp.float32)        # (tq, T)
        s = s - jnp.max(s, axis=-1, keepdims=True)
        p = jnp.exp(s)
        p = p * pl.reciprocal(jnp.sum(p, axis=-1, keepdims=True), approx=True)
        ctx_parts.append(jnp.dot(p.astype(jnp.bfloat16), v_scr[h],
                                 preferred_element_type=jnp.float32))        # (tq, Dh)
    # Single lane-concatenate (no masked sub-128-lane scratch stores).
    ctx = jnp.concatenate(ctx_parts, axis=-1).astype(jnp.bfloat16)           # (tq, E)

    # --- Output projection. ---
    out = jnp.dot(ctx, wo_ref[...], preferred_element_type=jnp.float32) + bo_ref[...]
    o_ref[0] = out.astype(o_ref.dtype)


def self_attention_pallas(x, wqkv, bqkv, wproj, bproj, n_head, *, tq=None):
    """x: (B, T, E) float32.  wqkv: (3E, E), bqkv: (3E,), wproj: (E, E), bproj: (E,)."""
    B, T, E = x.shape
    assert E % n_head == 0
    dh = E // n_head
    scale = dh ** (-0.5)

    # MXU-friendly query tile: 256 fills half the v6e/v7x MXU M dim; fall back to T.
    if tq is None:
        tq = T
        for cand in (512, 256, 128):
            if T % cand == 0:
                tq = cand
                break
    assert T % tq == 0 and (tq % 8 == 0 or tq == T), "query tile must divide T, 8-aligned"
    nq = T // tq
    # x is passed as bf16; dynamic sublane slices must stay 16-row aligned.
    assert tq % 16 == 0 or nq == 1, "bf16 query tile must be a multiple of 16 (or == T)"

    # KV projection chunk over T (bounds the (tkv, 2E) live range at batch boundaries).
    tkv = T
    for cand in (512, 256):
        if T % cand == 0:
            tkv = cand
            break

    # PyTorch nn.Linear: y = x @ W.T + b.  Pre-transpose, fuse K|V, pre-cast to bf16.
    wq = wqkv[0 * E:1 * E].T.astype(jnp.bfloat16)            # (E, E)
    wkv = wqkv[1 * E:3 * E].T.astype(jnp.bfloat16)           # (E, 2E): cols [0:E]=K, [E:]=V
    wo = wproj.T.astype(jnp.bfloat16)                        # (E, E)
    bq = bqkv[0 * E:1 * E].reshape(1, E).astype(jnp.float32)
    bkv = bqkv[1 * E:3 * E].reshape(1, 2 * E).astype(jnp.float32)
    bo = bproj.reshape(1, E).astype(jnp.float32)
    x_bf = x.astype(jnp.bfloat16)

    kernel = functools.partial(_attn_kernel, n_head=n_head, per_head_dim=dh,
                               scale=scale, tq=tq, tkv=tkv)

    flops = (2 * B * T * E * 3 * E          # QKV projections
             + 4 * B * T * T * E            # QK^T and P@V over all heads
             + 2 * B * T * E * E)           # output projection
    bytes_accessed = (2 * x_bf.size                                  # bf16 x, read once
                      + 2 * (wq.size + wkv.size + wo.size)           # bf16 weights
                      + 4 * (bq.size + bkv.size + bo.size)           # f32 biases
                      + 4 * B * T * E)                               # f32 output
    cost = pl.CostEstimate(flops=flops, transcendentals=B * n_head * T * T,
                           bytes_accessed=bytes_accessed)

    # VMEM budget: ~75% of physical (64 MiB on v7x, 128 MiB on v5e/v6e), capped at 96 MiB.
    try:
        vmem_cap = pltpu.get_tpu_info().vmem_capacity_bytes
    except Exception:
        vmem_cap = 64 * 1024 * 1024
    vmem_limit = min(int(vmem_cap * 3 // 4), 96 * 1024 * 1024)

    def build(single_buffer_consts):
        const_kwargs = {"pipeline_mode": pl.Buffered(1)} if single_buffer_consts else {}
        x_spec = pl.BlockSpec((1, T, E), lambda b, q: (b, 0, 0))
        o_spec = pl.BlockSpec((1, tq, E), lambda b, q: (b, q, 0))
        wq_spec = pl.BlockSpec((E, E), lambda b, q: (0, 0), **const_kwargs)
        wkv_spec = pl.BlockSpec((E, 2 * E), lambda b, q: (0, 0), **const_kwargs)
        wo_spec = pl.BlockSpec((E, E), lambda b, q: (0, 0), **const_kwargs)
        bq_spec = pl.BlockSpec((1, E), lambda b, q: (0, 0), **const_kwargs)
        bkv_spec = pl.BlockSpec((1, 2 * E), lambda b, q: (0, 0), **const_kwargs)
        bo_spec = pl.BlockSpec((1, E), lambda b, q: (0, 0), **const_kwargs)
        return pl.pallas_call(
            kernel,
            out_shape=jax.ShapeDtypeStruct((B, T, E), x.dtype),
            grid_spec=pltpu.PrefetchScalarGridSpec(
                num_scalar_prefetch=0,
                grid=(B, nq),                   # qi axis carries per-batch K/V scratch
                in_specs=[x_spec, wq_spec, bq_spec, wkv_spec, bkv_spec, wo_spec, bo_spec],
                out_specs=o_spec,
                scratch_shapes=[
                    pltpu.VMEM((n_head, dh, T), jnp.bfloat16),   # K^T per head
                    pltpu.VMEM((n_head, T, dh), jnp.bfloat16),   # V per head
                ],
            ),
            compiler_params=pltpu.CompilerParams(
                dimension_semantics=("parallel", "arbitrary"),
                vmem_limit_bytes=vmem_limit),
            cost_estimate=cost,
        )

    args = (x_bf, wq, bq, wkv, bkv, wo, bo)
    try:
        return build(True)(*args)
    except Exception:
        # Older JAX without BlockSpec pipeline_mode / Buffered(1): identical results,
        # just default double-buffering for the constant weight blocks.
        return build(False)(*args)


def self_attention_ref(x, wqkv, bqkv, wproj, bproj, n_head):
    """Pure-JAX f32 reference mirroring the PyTorch forward (dropout = identity)."""
    B, T, E = x.shape
    dh = E // n_head
    scale = dh ** (-0.5)
    qkv = x @ wqkv.T + bqkv                               # (B, T, 3E)
    qkv = qkv.reshape(B, T, 3, n_head, dh)
    q, k, v = qkv[:, :, 0], qkv[:, :, 1], qkv[:, :, 2]    # (B, T, H, Dh)
    q = q.transpose(0, 2, 1, 3)
    k = k.transpose(0, 2, 1, 3)
    v = v.transpose(0, 2, 1, 3)
    s = jnp.einsum("bhtd,bhsd->bhts", q, k) * scale
    p = jax.nn.softmax(s, axis=-1)
    ctx = jnp.einsum("bhts,bhsd->bhtd", p, v)
    ctx = ctx.transpose(0, 2, 1, 3).reshape(B, T, E)
    return ctx @ wproj.T + bproj


if __name__ == "__main__":
    B, T, E, n_head = 2, 32, 32, 4

    key = jax.random.PRNGKey(0)
    k_x, k_wqkv, k_bqkv, k_wp, k_bp = jax.random.split(key, 5)

    x = jax.random.normal(k_x, (B, T, E), dtype=jnp.float32)
    wqkv = jax.random.normal(k_wqkv, (3 * E, E), dtype=jnp.float32) * 0.1
    bqkv = jax.random.normal(k_bqkv, (3 * E,), dtype=jnp.float32) * 0.1
    wproj = jax.random.normal(k_wp, (E, E), dtype=jnp.float32) * 0.1
    bproj = jax.random.normal(k_bp, (E,), dtype=jnp.float32) * 0.1

    out = self_attention_pallas(x, wqkv, bqkv, wproj, bproj, n_head, tq=16)
    out = jax.block_until_ready(out)

    ref = self_attention_ref(x, wqkv, bqkv, wproj, bproj, n_head)
    assert out.shape == (B, T, E)
    # Tolerance loosened vs. pure-f32: all matmul operands are bf16 (f32 accumulation)
    # and the softmax denominator uses the approximate EUP reciprocal.
    assert jnp.allclose(out, ref, atol=2e-2, rtol=2e-2), "mismatch vs reference"

    print("KERNEL_OK")
</pallas_src>

<mosaic_0001>
module attributes {stable_mosaic.version = 11 : i64} {
  func.func @_attn_kernel(%arg0: i32, %arg1: i32, %arg2: memref<1x32x32xbf16, #tpu.memory_space<vmem>>, %arg3: memref<32x32xbf16, #tpu.memory_space<vmem>>, %arg4: memref<1x32xf32, #tpu.memory_space<vmem>>, %arg5: memref<32x64xbf16, #tpu.memory_space<vmem>>, %arg6: memref<1x64xf32, #tpu.memory_space<vmem>>, %arg7: memref<32x32xbf16, #tpu.memory_space<vmem>>, %arg8: memref<1x32xf32, #tpu.memory_space<vmem>>, %arg9: memref<1x16x32xf32, #tpu.memory_space<vmem>>, %arg10: memref<4x8x32xbf16, #tpu.memory_space<vmem>>, %arg11: memref<4x32x8xbf16, #tpu.memory_space<vmem>>) attributes {dimension_semantics = [#tpu.dimension_semantics<parallel>, #tpu.dimension_semantics<arbitrary>], iteration_bounds = array<i64: 2, 2>, scalar_prefetch = 0 : i64, scratch_operands = 2 : i64, tpu.core_type = #tpu.core_type<tc>, window_params = [{transform_indices = @transform_0, window_bounds = array<i64: 1, 32, 32>}, {pipeline_mode = #tpu.pipeline_mode<synchronous>, transform_indices = @transform_1, window_bounds = array<i64: 32, 32>}, {pipeline_mode = #tpu.pipeline_mode<synchronous>, transform_indices = @transform_2, window_bounds = array<i64: 1, 32>}, {pipeline_mode = #tpu.pipeline_mode<synchronous>, transform_indices = @transform_3, window_bounds = array<i64: 32, 64>}, {pipeline_mode = #tpu.pipeline_mode<synchronous>, transform_indices = @transform_4, window_bounds = array<i64: 1, 64>}, {pipeline_mode = #tpu.pipeline_mode<synchronous>, transform_indices = @transform_5, window_bounds = array<i64: 32, 32>}, {pipeline_mode = #tpu.pipeline_mode<synchronous>, transform_indices = @transform_6, window_bounds = array<i64: 1, 32>}, {transform_indices = @transform_7, window_bounds = array<i64: 1, 16, 32>}]} {
    %c0_i32 = arith.constant 0 : i32
    %0 = arith.cmpi eq, %arg1, %c0_i32 : i32
    %1 = arith.extui %0 : i1 to i32
    %c0_i32_0 = arith.constant 0 : i32
    %2 = arith.cmpi ne, %1, %c0_i32_0 : i32
    scf.if %2 {
      %c0_52 = arith.constant 0 : index
      %c0_53 = arith.constant 0 : index
      %c0_54 = arith.constant 0 : index
      %98 = vector.load %arg2[%c0_52, %c0_53, %c0_54] : memref<1x32x32xbf16, #tpu.memory_space<vmem>>, vector<1x32x32xbf16>
      %99 = vector.shape_cast %98 : vector<1x32x32xbf16> to vector<32x32xbf16>
      %c0_55 = arith.constant 0 : index
      %c0_56 = arith.constant 0 : index
      %100 = vector.load %arg5[%c0_55, %c0_56] : memref<32x64xbf16, #tpu.memory_space<vmem>>, vector<32x64xbf16>
      %cst_57 = arith.constant dense<0.000000e+00> : vector<32x64xf32>
      %101 = tpu.matmul %99, %100, %cst_57 {dimension_numbers = #tpu.dot_dimension_numbers<[1], [0], [0], [1], [0, 0, 1, 1], [], []>} : vector<32x32xbf16>, vector<32x64xbf16>, vector<32x64xf32> -> vector<32x64xf32>
      %c0_58 = arith.constant 0 : index
      %c0_59 = arith.constant 0 : index
      %102 = vector.load %arg6[%c0_58, %c0_59] : memref<1x64xf32, #tpu.memory_space<vmem>>, vector<1x64xf32>
      %103 = vector.broadcast %102 : vector<1x64xf32> to vector<32x64xf32>
      %104 = arith.addf %101, %103 : vector<32x64xf32>
      %105 = vector.extract_strided_slice %104 {offsets = [0, 0], sizes = [32, 32], strides = [1, 1]} : vector<32x64xf32> to vector<32x32xf32>
      %106 = tpu.transpose %105, [1, 0] : vector<32x32xf32> -> vector<32x32xf32>
      %107 = arith.truncf %106 : vector<32x32xf32> to vector<32x32xbf16>
      %108 = vector.extract_strided_slice %104 {offsets = [0, 32], sizes = [32, 32], strides = [1, 1]} : vector<32x64xf32> to vector<32x32xf32>
      %109 = arith.truncf %108 : vector<32x32xf32> to vector<32x32xbf16>
      %110 = vector.extract_strided_slice %107 {offsets = [0, 0], sizes = [8, 32], strides = [1, 1]} : vector<32x32xbf16> to vector<8x32xbf16>
      %c0_60 = arith.constant 0 : index
      %c0_61 = arith.constant 0 : index
      %c0_62 = arith.constant 0 : index
      %111 = vector.load %arg10[%c0_60, %c0_61, %c0_62] : memref<4x8x32xbf16, #tpu.memory_space<vmem>>, vector<1x8x32xbf16>
      %112 = vector.shape_cast %111 : vector<1x8x32xbf16> to vector<8x32xbf16>
      %113 = vector.shape_cast %110 : vector<8x32xbf16> to vector<1x8x32xbf16>
      tpu.vector_store %arg10[%c0_60, %c0_61, %c0_62], %113 {strides = array<i32>} : memref<4x8x32xbf16, #tpu.memory_space<vmem>>, vector<1x8x32xbf16>,
      %114 = vector.extract_strided_slice %109 {offsets = [0, 0], sizes = [32, 8], strides = [1, 1]} : vector<32x32xbf16> to vector<32x8xbf16>
      %c0_63 = arith.constant 0 : index
      %c0_64 = arith.constant 0 : index
      %c0_65 = arith.constant 0 : index
      %115 = vector.load %arg11[%c0_63, %c0_64, %c0_65] : memref<4x32x8xbf16, #tpu.memory_space<vmem>>, vector<1x32x8xbf16>
      %116 = vector.shape_cast %115 : vector<1x32x8xbf16> to vector<32x8xbf16>
      %117 = vector.shape_cast %114 : vector<32x8xbf16> to vector<1x32x8xbf16>
      tpu.vector_store %arg11[%c0_63, %c0_64, %c0_65], %117 {strides = array<i32>} : memref<4x32x8xbf16, #tpu.memory_space<vmem>>, vector<1x32x8xbf16>,
      %118 = vector.extract_strided_slice %107 {offsets = [8, 0], sizes = [8, 32], strides = [1, 1]} : vector<32x32xbf16> to vector<8x32xbf16>
      %c1_66 = arith.constant 1 : index
      %c0_67 = arith.constant 0 : index
      %c0_68 = arith.constant 0 : index
      %119 = vector.load %arg10[%c1_66, %c0_67, %c0_68] : memref<4x8x32xbf16, #tpu.memory_space<vmem>>, vector<1x8x32xbf16>
      %120 = vector.shape_cast %119 : vector<1x8x32xbf16> to vector<8x32xbf16>
      %121 = vector.shape_cast %118 : vector<8x32xbf16> to vector<1x8x32xbf16>
      tpu.vector_store %arg10[%c1_66, %c0_67, %c0_68], %121 {strides = array<i32>} : memref<4x8x32xbf16, #tpu.memory_space<vmem>>, vector<1x8x32xbf16>,
      %122 = vector.extract_strided_slice %109 {offsets = [0, 8], sizes = [32, 8], strides = [1, 1]} : vector<32x32xbf16> to vector<32x8xbf16>
      %c1_69 = arith.constant 1 : index
      %c0_70 = arith.constant 0 : index
      %c0_71 = arith.constant 0 : index
      %123 = vector.load %arg11[%c1_69, %c0_70, %c0_71] : memref<4x32x8xbf16, #tpu.memory_space<vmem>>, vector<1x32x8xbf16>
      %124 = vector.shape_cast %123 : vector<1x32x8xbf16> to vector<32x8xbf16>
      %125 = vector.shape_cast %122 : vector<32x8xbf16> to vector<1x32x8xbf16>
      tpu.vector_store %arg11[%c1_69, %c0_70, %c0_71], %125 {strides = array<i32>} : memref<4x32x8xbf16, #tpu.memory_space<vmem>>, vector<1x32x8xbf16>,
      %126 = vector.extract_strided_slice %107 {offsets = [16, 0], sizes = [8, 32], strides = [1, 1]} : vector<32x32xbf16> to vector<8x32xbf16>
      %c2_72 = arith.constant 2 : index
      %c0_73 = arith.constant 0 : index
      %c0_74 = arith.constant 0 : index
      %127 = vector.load %arg10[%c2_72, %c0_73, %c0_74] : memref<4x8x32xbf16, #tpu.memory_space<vmem>>, vector<1x8x32xbf16>
      %128 = vector.shape_cast %127 : vector<1x8x32xbf16> to vector<8x32xbf16>
      %129 = vector.shape_cast %126 : vector<8x32xbf16> to vector<1x8x32xbf16>
      tpu.vector_store %arg10[%c2_72, %c0_73, %c0_74], %129 {strides = array<i32>} : memref<4x8x32xbf16, #tpu.memory_space<vmem>>, vector<1x8x32xbf16>,
      %130 = vector.extract_strided_slice %109 {offsets = [0, 16], sizes = [32, 8], strides = [1, 1]} : vector<32x32xbf16> to vector<32x8xbf16>
      %c2_75 = arith.constant 2 : index
      %c0_76 = arith.constant 0 : index
      %c0_77 = arith.constant 0 : index
      %131 = vector.load %arg11[%c2_75, %c0_76, %c0_77] : memref<4x32x8xbf16, #tpu.memory_space<vmem>>, vector<1x32x8xbf16>
      %132 = vector.shape_cast %131 : vector<1x32x8xbf16> to vector<32x8xbf16>
      %133 = vector.shape_cast %130 : vector<32x8xbf16> to vector<1x32x8xbf16>
      tpu.vector_store %arg11[%c2_75, %c0_76, %c0_77], %133 {strides = array<i32>} : memref<4x32x8xbf16, #tpu.memory_space<vmem>>, vector<1x32x8xbf16>,
      %134 = vector.extract_strided_slice %107 {offsets = [24, 0], sizes = [8, 32], strides = [1, 1]} : vector<32x32xbf16> to vector<8x32xbf16>
      %c3_78 = arith.constant 3 : index
      %c0_79 = arith.constant 0 : index
      %c0_80 = arith.constant 0 : index
      %135 = vector.load %arg10[%c3_78, %c0_79, %c0_80] : memref<4x8x32xbf16, #tpu.memory_space<vmem>>, vector<1x8x32xbf16>
      %136 = vector.shape_cast %135 : vector<1x8x32xbf16> to vector<8x32xbf16>
      %137 = vector.shape_cast %134 : vector<8x32xbf16> to vector<1x8x32xbf16>
      tpu.vector_store %arg10[%c3_78, %c0_79, %c0_80], %137 {strides = array<i32>} : memref<4x8x32xbf16, #tpu.memory_space<vmem>>, vector<1x8x32xbf16>,
      %138 = vector.extract_strided_slice %109 {offsets = [0, 24], sizes = [32, 8], strides = [1, 1]} : vector<32x32xbf16> to vector<32x8xbf16>
      %c3_81 = arith.constant 3 : index
      %c0_82 = arith.constant 0 : index
      %c0_83 = arith.constant 0 : index
      %139 = vector.load %arg11[%c3_81, %c0_82, %c0_83] : memref<4x32x8xbf16, #tpu.memory_space<vmem>>, vector<1x32x8xbf16>
      %140 = vector.shape_cast %139 : vector<1x32x8xbf16> to vector<32x8xbf16>
      %141 = vector.shape_cast %138 : vector<32x8xbf16> to vector<1x32x8xbf16>
      tpu.vector_store %arg11[%c3_81, %c0_82, %c0_83], %141 {strides = array<i32>} : memref<4x32x8xbf16, #tpu.memory_space<vmem>>, vector<1x32x8xbf16>,
    } else {
    }
    %c16_i32 = arith.constant 16 : i32
    %3 = arith.muli %arg1, %c16_i32 : i32
    %4 = tpu.assume_multiple %3, 16 : i32
    %c0 = arith.constant 0 : index
    %5 = arith.index_cast %4 : i32 to index
    %c0_1 = arith.constant 0 : index
    %6 = vector.load %arg2[%c0, %5, %c0_1] : memref<1x32x32xbf16, #tpu.memory_space<vmem>>, vector<1x16x32xbf16>
    %7 = vector.shape_cast %6 : vector<1x16x32xbf16> to vector<16x32xbf16>
    %c0_2 = arith.constant 0 : index
    %c0_3 = arith.constant 0 : index
    %8 = vector.load %arg3[%c0_2, %c0_3] : memref<32x32xbf16, #tpu.memory_space<vmem>>, vector<32x32xbf16>
    %cst = arith.constant dense<0.000000e+00> : vector<16x32xf32>
    %9 = tpu.matmul %7, %8, %cst {dimension_numbers = #tpu.dot_dimension_numbers<[1], [0], [0], [1], [0, 0, 1, 1], [], []>} : vector<16x32xbf16>, vector<32x32xbf16>, vector<16x32xf32> -> vector<16x32xf32>
    %c0_4 = arith.constant 0 : index
    %c0_5 = arith.constant 0 : index
    %10 = vector.load %arg4[%c0_4, %c0_5] : memref<1x32xf32, #tpu.memory_space<vmem>>, vector<1x32xf32>
    %11 = vector.broadcast %10 : vector<1x32xf32> to vector<16x32xf32>
    %12 = arith.addf %9, %11 : vector<16x32xf32>
    %cst_6 = arith.constant 0.353553385 : f32
    %13 = vector.broadcast %cst_6 : f32 to vector<16x32xf32>
    %14 = arith.mulf %12, %13 : vector<16x32xf32>
    %15 = arith.truncf %14 : vector<16x32xf32> to vector<16x32xbf16>
    %16 = vector.extract_strided_slice %15 {offsets = [0, 0], sizes = [16, 8], strides = [1, 1]} : vector<16x32xbf16> to vector<16x8xbf16>
    %c0_7 = arith.constant 0 : index
    %c0_8 = arith.constant 0 : index
    %c0_9 = arith.constant 0 : index
    %17 = vector.load %arg10[%c0_7, %c0_8, %c0_9] : memref<4x8x32xbf16, #tpu.memory_space<vmem>>, vector<1x8x32xbf16>
    %18 = vector.shape_cast %17 : vector<1x8x32xbf16> to vector<8x32xbf16>
    %cst_10 = arith.constant dense<0.000000e+00> : vector<16x32xf32>
    %19 = tpu.matmul %16, %18, %cst_10 {dimension_numbers = #tpu.dot_dimension_numbers<[1], [0], [0], [1], [0, 0, 1, 1], [], []>} : vector<16x8xbf16>, vector<8x32xbf16>, vector<16x32xf32> -> vector<16x32xf32>
    %cst_11 = arith.constant dense<0xFF800000> : vector<16xf32>
    %20 = vector.multi_reduction <maximumf>, %19, %cst_11 [1] : vector<16x32xf32> to vector<16xf32>
    %21 = vector.shape_cast %20 : vector<16xf32> to vector<16x1xf32>
    %22 = vector.broadcast %21 : vector<16x1xf32> to vector<16x32xf32>
    %23 = arith.subf %19, %22 : vector<16x32xf32>
    %24 = math.exp %23 : vector<16x32xf32>
    %cst_12 = arith.constant dense<0.000000e+00> : vector<16xf32>
    %25 = vector.multi_reduction <add>, %24, %cst_12 [1] : vector<16x32xf32> to vector<16xf32>
    %26 = vector.shape_cast %25 : vector<16xf32> to vector<16x1xf32>
    %27 = tpu.reciprocal %26 {approx = true} : vector<16x1xf32> -> vector<16x1xf32>
    %28 = vector.broadcast %27 : vector<16x1xf32> to vector<16x32xf32>
    %29 = arith.mulf %24, %28 : vector<16x32xf32>
    %30 = arith.truncf %29 : vector<16x32xf32> to vector<16x32xbf16>
    %c0_13 = arith.constant 0 : index
    %c0_14 = arith.constant 0 : index
    %c0_15 = arith.constant 0 : index
    %31 = vector.load %arg11[%c0_13, %c0_14, %c0_15] : memref<4x32x8xbf16, #tpu.memory_space<vmem>>, vector<1x32x8xbf16>
    %32 = vector.shape_cast %31 : vector<1x32x8xbf16> to vector<32x8xbf16>
    %cst_16 = arith.constant dense<0.000000e+00> : vector<16x8xf32>
    %33 = tpu.matmul %30, %32, %cst_16 {dimension_numbers = #tpu.dot_dimension_numbers<[1], [0], [0], [1], [0, 0, 1, 1], [], []>} : vector<16x32xbf16>, vector<32x8xbf16>, vector<16x8xf32> -> vector<16x8xf32>
    %34 = vector.extract_strided_slice %15 {offsets = [0, 8], sizes = [16, 8], strides = [1, 1]} : vector<16x32xbf16> to vector<16x8xbf16>
    %c1 = arith.constant 1 : index
    %c0_17 = arith.constant 0 : index
    %c0_18 = arith.constant 0 : index
    %35 = vector.load %arg10[%c1, %c0_17, %c0_18] : memref<4x8x32xbf16, #tpu.memory_space<vmem>>, vector<1x8x32xbf16>
    %36 = vector.shape_cast %35 : vector<1x8x32xbf16> to vector<8x32xbf16>
    %cst_19 = arith.constant dense<0.000000e+00> : vector<16x32xf32>
    %37 = tpu.matmul %34, %36, %cst_19 {dimension_numbers = #tpu.dot_dimension_numbers<[1], [0], [0], [1], [0, 0, 1, 1], [], []>} : vector<16x8xbf16>, vector<8x32xbf16>, vector<16x32xf32> -> vector<16x32xf32>
    %cst_20 = arith.constant dense<0xFF800000> : vector<16xf32>
    %38 = vector.multi_reduction <maximumf>, %37, %cst_20 [1] : vector<16x32xf32> to vector<16xf32>
    %39 = vector.shape_cast %38 : vector<16xf32> to vector<16x1xf32>
    %40 = vector.broadcast %39 : vector<16x1xf32> to vector<16x32xf32>
    %41 = arith.subf %37, %40 : vector<16x32xf32>
    %42 = math.exp %41 : vector<16x32xf32>
    %cst_21 = arith.constant dense<0.000000e+00> : vector<16xf32>
    %43 = vector.multi_reduction <add>, %42, %cst_21 [1] : vector<16x32xf32> to vector<16xf32>
    %44 = vector.shape_cast %43 : vector<16xf32> to vector<16x1xf32>
    %45 = tpu.reciprocal %44 {approx = true} : vector<16x1xf32> -> vector<16x1xf32>
    %46 = vector.broadcast %45 : vector<16x1xf32> to vector<16x32xf32>
    %47 = arith.mulf %42, %46 : vector<16x32xf32>
    %48 = arith.truncf %47 : vector<16x32xf32> to vector<16x32xbf16>
    %c1_22 = arith.constant 1 : index
    %c0_23 = arith.constant 0 : index
    %c0_24 = arith.constant 0 : index
    %49 = vector.load %arg11[%c1_22, %c0_23, %c0_24] : memref<4x32x8xbf16, #tpu.memory_space<vmem>>, vector<1x32x8xbf16>
    %50 = vector.shape_cast %49 : vector<1x32x8xbf16> to vector<32x8xbf16>
    %cst_25 = arith.constant dense<0.000000e+00> : vector<16x8xf32>
    %51 = tpu.matmul %48, %50, %cst_25 {dimension_numbers = #tpu.dot_dimension_numbers<[1], [0], [0], [1], [0, 0, 1, 1], [], []>} : vector<16x32xbf16>, vector<32x8xbf16>, vector<16x8xf32> -> vector<16x8xf32>
    %52 = vector.extract_strided_slice %15 {offsets = [0, 16], sizes = [16, 8], strides = [1, 1]} : vector<16x32xbf16> to vector<16x8xbf16>
    %c2 = arith.constant 2 : index
    %c0_26 = arith.constant 0 : index
    %c0_27 = arith.constant 0 : index
    %53 = vector.load %arg10[%c2, %c0_26, %c0_27] : memref<4x8x32xbf16, #tpu.memory_space<vmem>>, vector<1x8x32xbf16>
    %54 = vector.shape_cast %53 : vector<1x8x32xbf16> to vector<8x32xbf16>
    %cst_28 = arith.constant dense<0.000000e+00> : vector<16x32xf32>
    %55 = tpu.matmul %52, %54, %cst_28 {dimension_numbers = #tpu.dot_dimension_numbers<[1], [0], [0], [1], [0, 0, 1, 1], [], []>} : vector<16x8xbf16>, vector<8x32xbf16>, vector<16x32xf32> -> vector<16x32xf32>
    %cst_29 = arith.constant dense<0xFF800000> : vector<16xf32>
    %56 = vector.multi_reduction <maximumf>, %55, %cst_29 [1] : vector<16x32xf32> to vector<16xf32>
    %57 = vector.shape_cast %56 : vector<16xf32> to vector<16x1xf32>
    %58 = vector.broadcast %57 : vector<16x1xf32> to vector<16x32xf32>
    %59 = arith.subf %55, %58 : vector<16x32xf32>
    %60 = math.exp %59 : vector<16x32xf32>
    %cst_30 = arith.constant dense<0.000000e+00> : vector<16xf32>
    %61 = vector.multi_reduction <add>, %60, %cst_30 [1] : vector<16x32xf32> to vector<16xf32>
    %62 = vector.shape_cast %61 : vector<16xf32> to vector<16x1xf32>
    %63 = tpu.reciprocal %62 {approx = true} : vector<16x1xf32> -> vector<16x1xf32>
    %64 = vector.broadcast %63 : vector<16x1xf32> to vector<16x32xf32>
    %65 = arith.mulf %60, %64 : vector<16x32xf32>
    %66 = arith.truncf %65 : vector<16x32xf32> to vector<16x32xbf16>
    %c2_31 = arith.constant 2 : index
    %c0_32 = arith.constant 0 : index
    %c0_33 = arith.constant 0 : index
    %67 = vector.load %arg11[%c2_31, %c0_32, %c0_33] : memref<4x32x8xbf16, #tpu.memory_space<vmem>>, vector<1x32x8xbf16>
    %68 = vector.shape_cast %67 : vector<1x32x8xbf16> to vector<32x8xbf16>
    %cst_34 = arith.constant dense<0.000000e+00> : vector<16x8xf32>
    %69 = tpu.matmul %66, %68, %cst_34 {dimension_numbers = #tpu.dot_dimension_numbers<[1], [0], [0], [1], [0, 0, 1, 1], [], []>} : vector<16x32xbf16>, vector<32x8xbf16>, vector<16x8xf32> -> vector<16x8xf32>
    %70 = vector.extract_strided_slice %15 {offsets = [0, 24], sizes = [16, 8], strides = [1, 1]} : vector<16x32xbf16> to vector<16x8xbf16>
    %c3 = arith.constant 3 : index
    %c0_35 = arith.constant 0 : index
    %c0_36 = arith.constant 0 : index
    %71 = vector.load %arg10[%c3, %c0_35, %c0_36] : memref<4x8x32xbf16, #tpu.memory_space<vmem>>, vector<1x8x32xbf16>
    %72 = vector.shape_cast %71 : vector<1x8x32xbf16> to vector<8x32xbf16>
    %cst_37 = arith.constant dense<0.000000e+00> : vector<16x32xf32>
    %73 = tpu.matmul %70, %72, %cst_37 {dimension_numbers = #tpu.dot_dimension_numbers<[1], [0], [0], [1], [0, 0, 1, 1], [], []>} : vector<16x8xbf16>, vector<8x32xbf16>, vector<16x32xf32> -> vector<16x32xf32>
    %cst_38 = arith.constant dense<0xFF800000> : vector<16xf32>
    %74 = vector.multi_reduction <maximumf>, %73, %cst_38 [1] : vector<16x32xf32> to vector<16xf32>
    %75 = vector.shape_cast %74 : vector<16xf32> to vector<16x1xf32>
    %76 = vector.broadcast %75 : vector<16x1xf32> to vector<16x32xf32>
    %77 = arith.subf %73, %76 : vector<16x32xf32>
    %78 = math.exp %77 : vector<16x32xf32>
    %cst_39 = arith.constant dense<0.000000e+00> : vector<16xf32>
    %79 = vector.multi_reduction <add>, %78, %cst_39 [1] : vector<16x32xf32> to vector<16xf32>
    %80 = vector.shape_cast %79 : vector<16xf32> to vector<16x1xf32>
    %81 = tpu.reciprocal %80 {approx = true} : vector<16x1xf32> -> vector<16x1xf32>
    %82 = vector.broadcast %81 : vector<16x1xf32> to vector<16x32xf32>
    %83 = arith.mulf %78, %82 : vector<16x32xf32>
    %84 = arith.truncf %83 : vector<16x32xf32> to vector<16x32xbf16>
    %c3_40 = arith.constant 3 : index
    %c0_41 = arith.constant 0 : index
    %c0_42 = arith.constant 0 : index
    %85 = vector.load %arg11[%c3_40, %c0_41, %c0_42] : memref<4x32x8xbf16, #tpu.memory_space<vmem>>, vector<1x32x8xbf16>
    %86 = vector.shape_cast %85 : vector<1x32x8xbf16> to vector<32x8xbf16>
    %cst_43 = arith.constant dense<0.000000e+00> : vector<16x8xf32>
    %87 = tpu.matmul %84, %86, %cst_43 {dimension_numbers = #tpu.dot_dimension_numbers<[1], [0], [0], [1], [0, 0, 1, 1], [], []>} : vector<16x32xbf16>, vector<32x8xbf16>, vector<16x8xf32> -> vector<16x8xf32>
    %88 = tpu.concatenate %33, %51, %69, %87 in 1 : vector<16x8xf32>, vector<16x8xf32>, vector<16x8xf32>, vector<16x8xf32> -> vector<16x32xf32>
    %89 = arith.truncf %88 : vector<16x32xf32> to vector<16x32xbf16>
    %c0_44 = arith.constant 0 : index
    %c0_45 = arith.constant 0 : index
    %90 = vector.load %arg7[%c0_44, %c0_45] : memref<32x32xbf16, #tpu.memory_space<vmem>>, vector<32x32xbf16>
    %cst_46 = arith.constant dense<0.000000e+00> : vector<16x32xf32>
    %91 = tpu.matmul %89, %90, %cst_46 {dimension_numbers = #tpu.dot_dimension_numbers<[1], [0], [0], [1], [0, 0, 1, 1], [], []>} : vector<16x32xbf16>, vector<32x32xbf16>, vector<16x32xf32> -> vector<16x32xf32>
    %c0_47 = arith.constant 0 : index
    %c0_48 = arith.constant 0 : index
    %92 = vector.load %arg8[%c0_47, %c0_48] : memref<1x32xf32, #tpu.memory_space<vmem>>, vector<1x32xf32>
    %93 = vector.broadcast %92 : vector<1x32xf32> to vector<16x32xf32>
    %94 = arith.addf %91, %93 : vector<16x32xf32>
    %c0_49 = arith.constant 0 : index
    %c0_50 = arith.constant 0 : index
    %c0_51 = arith.constant 0 : index
    %95 = vector.load %arg9[%c0_49, %c0_50, %c0_51] : memref<1x16x32xf32, #tpu.memory_space<vmem>>, vector<1x16x32xf32>
    %96 = vector.shape_cast %95 : vector<1x16x32xf32> to vector<16x32xf32>
    %97 = vector.shape_cast %94 : vector<16x32xf32> to vector<1x16x32xf32>
    tpu.vector_store %arg9[%c0_49, %c0_50, %c0_51], %97 {strides = array<i32>} : memref<1x16x32xf32, #tpu.memory_space<vmem>>, vector<1x16x32xf32>,
    return
  }
  func.func @transform_0(%arg0: i32, %arg1: i32) -> (i32, i32, i32) {
    %c0_i32 = arith.constant 0 : i32
    %c0_i32_0 = arith.constant 0 : i32
    %c0_i32_1 = arith.constant 0 : i32
    return %arg0, %c0_i32, %c0_i32_0 : i32, i32, i32
  }
  func.func @transform_1(%arg0: i32, %arg1: i32) -> (i32, i32) {
    %c0_i32 = arith.constant 0 : i32
    %c0_i32_0 = arith.constant 0 : i32
    %c0_i32_1 = arith.constant 0 : i32
    return %c0_i32, %c0_i32_0 : i32, i32
  }
  func.func @transform_2(%arg0: i32, %arg1: i32) -> (i32, i32) {
    %c0_i32 = arith.constant 0 : i32
    %c0_i32_0 = arith.constant 0 : i32
    %c0_i32_1 = arith.constant 0 : i32
    return %c0_i32, %c0_i32_0 : i32, i32
  }
  func.func @transform_3(%arg0: i32, %arg1: i32) -> (i32, i32) {
    %c0_i32 = arith.constant 0 : i32
    %c0_i32_0 = arith.constant 0 : i32
    %c0_i32_1 = arith.constant 0 : i32
    return %c0_i32, %c0_i32_0 : i32, i32
  }
  func.func @transform_4(%arg0: i32, %arg1: i32) -> (i32, i32) {
    %c0_i32 = arith.constant 0 : i32
    %c0_i32_0 = arith.constant 0 : i32
    %c0_i32_1 = arith.constant 0 : i32
    return %c0_i32, %c0_i32_0 : i32, i32
  }
  func.func @transform_5(%arg0: i32, %arg1: i32) -> (i32, i32) {
    %c0_i32 = arith.constant 0 : i32
    %c0_i32_0 = arith.constant 0 : i32
    %c0_i32_1 = arith.constant 0 : i32
    return %c0_i32, %c0_i32_0 : i32, i32
  }
  func.func @transform_6(%arg0: i32, %arg1: i32) -> (i32, i32) {
    %c0_i32 = arith.constant 0 : i32
    %c0_i32_0 = arith.constant 0 : i32
    %c0_i32_1 = arith.constant 0 : i32
    return %c0_i32, %c0_i32_0 : i32, i32
  }
  func.func @transform_7(%arg0: i32, %arg1: i32) -> (i32, i32, i32) {
    %c0_i32 = arith.constant 0 : i32
    %c0_i32_0 = arith.constant 0 : i32
    return %arg0, %arg1, %c0_i32 : i32, i32, i32
  }
}

module attributes {stable_mosaic.version = 11 : i64} {
  func.func @_attn_kernel(%arg0: i32, %arg1: i32, %arg2: memref<1x32x32xbf16, #tpu.memory_space<vmem>>, %arg3: memref<32x32xbf16, #tpu.memory_space<vmem>>, %arg4: memref<1x32xf32, #tpu.memory_space<vmem>>, %arg5: memref<32x64xbf16, #tpu.memory_space<vmem>>, %arg6: memref<1x64xf32, #tpu.memory_space<vmem>>, %arg7: memref<32x32xbf16, #tpu.memory_space<vmem>>, %arg8: memref<1x32xf32, #tpu.memory_space<vmem>>, %arg9: memref<1x16x32xf32, #tpu.memory_space<vmem>>, %arg10: memref<4x8x32xbf16, #tpu.memory_space<vmem>>, %arg11: memref<4x32x8xbf16, #tpu.memory_space<vmem>>) attributes {dimension_semantics = [#tpu.dimension_semantics<parallel>, #tpu.dimension_semantics<arbitrary>], iteration_bounds = array<i64: 2, 2>, scalar_prefetch = 0 : i64, scratch_operands = 2 : i64, tpu.core_type = #tpu.core_type<tc>, window_params = [{transform_indices = @transform_0, window_bounds = array<i64: 1, 32, 32>}, {pipeline_mode = #tpu.pipeline_mode<synchronous>, transform_indices = @transform_1, window_bounds = array<i64: 32, 32>}, {pipeline_mode = #tpu.pipeline_mode<synchronous>, transform_indices = @transform_2, window_bounds = array<i64: 1, 32>}, {pipeline_mode = #tpu.pipeline_mode<synchronous>, transform_indices = @transform_3, window_bounds = array<i64: 32, 64>}, {pipeline_mode = #tpu.pipeline_mode<synchronous>, transform_indices = @transform_4, window_bounds = array<i64: 1, 64>}, {pipeline_mode = #tpu.pipeline_mode<synchronous>, transform_indices = @transform_5, window_bounds = array<i64: 32, 32>}, {pipeline_mode = #tpu.pipeline_mode<synchronous>, transform_indices = @transform_6, window_bounds = array<i64: 1, 32>}, {transform_indices = @transform_7, window_bounds = array<i64: 1, 16, 32>}]} {
    %c0_i32 = arith.constant 0 : i32
    %0 = arith.cmpi eq, %arg1, %c0_i32 : i32
    %1 = arith.extui %0 : i1 to i32
    %c0_i32_0 = arith.constant 0 : i32
    %2 = arith.cmpi ne, %1, %c0_i32_0 : i32
    scf.if %2 {
      %c0_52 = arith.constant 0 : index
      %c0_53 = arith.constant 0 : index
      %c0_54 = arith.constant 0 : index
      %98 = vector.load %arg2[%c0_52, %c0_53, %c0_54] : memref<1x32x32xbf16, #tpu.memory_space<vmem>>, vector<1x32x32xbf16>
      %99 = vector.shape_cast %98 : vector<1x32x32xbf16> to vector<32x32xbf16>
      %c0_55 = arith.constant 0 : index
      %c0_56 = arith.constant 0 : index
      %100 = vector.load %arg5[%c0_55, %c0_56] : memref<32x64xbf16, #tpu.memory_space<vmem>>, vector<32x64xbf16>
      %cst_57 = arith.constant dense<0.000000e+00> : vector<32x64xf32>
      %101 = tpu.matmul %99, %100, %cst_57 {dimension_numbers = #tpu.dot_dimension_numbers<[1], [0], [0], [1], [0, 0, 1, 1], [], []>} : vector<32x32xbf16>, vector<32x64xbf16>, vector<32x64xf32> -> vector<32x64xf32>
      %c0_58 = arith.constant 0 : index
      %c0_59 = arith.constant 0 : index
      %102 = vector.load %arg6[%c0_58, %c0_59] : memref<1x64xf32, #tpu.memory_space<vmem>>, vector<1x64xf32>
      %103 = vector.broadcast %102 : vector<1x64xf32> to vector<32x64xf32>
      %104 = arith.addf %101, %103 : vector<32x64xf32>
      %105 = vector.extract_strided_slice %104 {offsets = [0, 0], sizes = [32, 32], strides = [1, 1]} : vector<32x64xf32> to vector<32x32xf32>
      %106 = tpu.transpose %105, [1, 0] : vector<32x32xf32> -> vector<32x32xf32>
      %107 = arith.truncf %106 : vector<32x32xf32> to vector<32x32xbf16>
      %108 = vector.extract_strided_slice %104 {offsets = [0, 32], sizes = [32, 32], strides = [1, 1]} : vector<32x64xf32> to vector<32x32xf32>
      %109 = arith.truncf %108 : vector<32x32xf32> to vector<32x32xbf16>
      %110 = vector.extract_strided_slice %107 {offsets = [0, 0], sizes = [8, 32], strides = [1, 1]} : vector<32x32xbf16> to vector<8x32xbf16>
      %c0_60 = arith.constant 0 : index
      %c0_61 = arith.constant 0 : index
      %c0_62 = arith.constant 0 : index
      %111 = vector.load %arg10[%c0_60, %c0_61, %c0_62] : memref<4x8x32xbf16, #tpu.memory_space<vmem>>, vector<1x8x32xbf16>
      %112 = vector.shape_cast %111 : vector<1x8x32xbf16> to vector<8x32xbf16>
      %113 = vector.shape_cast %110 : vector<8x32xbf16> to vector<1x8x32xbf16>
      tpu.vector_store %arg10[%c0_60, %c0_61, %c0_62], %113 {strides = array<i32>} : memref<4x8x32xbf16, #tpu.memory_space<vmem>>, vector<1x8x32xbf16>,
      %114 = vector.extract_strided_slice %109 {offsets = [0, 0], sizes = [32, 8], strides = [1, 1]} : vector<32x32xbf16> to vector<32x8xbf16>
      %c0_63 = arith.constant 0 : index
      %c0_64 = arith.constant 0 : index
      %c0_65 = arith.constant 0 : index
      %115 = vector.load %arg11[%c0_63, %c0_64, %c0_65] : memref<4x32x8xbf16, #tpu.memory_space<vmem>>, vector<1x32x8xbf16>
      %116 = vector.shape_cast %115 : vector<1x32x8xbf16> to vector<32x8xbf16>
      %117 = vector.shape_cast %114 : vector<32x8xbf16> to vector<1x32x8xbf16>
      tpu.vector_store %arg11[%c0_63, %c0_64, %c0_65], %117 {strides = array<i32>} : memref<4x32x8xbf16, #tpu.memory_space<vmem>>, vector<1x32x8xbf16>,
      %118 = vector.extract_strided_slice %107 {offsets = [8, 0], sizes = [8, 32], strides = [1, 1]} : vector<32x32xbf16> to vector<8x32xbf16>
      %c1_66 = arith.constant 1 : index
      %c0_67 = arith.constant 0 : index
      %c0_68 = arith.constant 0 : index
      %119 = vector.load %arg10[%c1_66, %c0_67, %c0_68] : memref<4x8x32xbf16, #tpu.memory_space<vmem>>, vector<1x8x32xbf16>
      %120 = vector.shape_cast %119 : vector<1x8x32xbf16> to vector<8x32xbf16>
      %121 = vector.shape_cast %118 : vector<8x32xbf16> to vector<1x8x32xbf16>
      tpu.vector_store %arg10[%c1_66, %c0_67, %c0_68], %121 {strides = array<i32>} : memref<4x8x32xbf16, #tpu.memory_space<vmem>>, vector<1x8x32xbf16>,
      %122 = vector.extract_strided_slice %109 {offsets = [0, 8], sizes = [32, 8], strides = [1, 1]} : vector<32x32xbf16> to vector<32x8xbf16>
      %c1_69 = arith.constant 1 : index
      %c0_70 = arith.constant 0 : index
      %c0_71 = arith.constant 0 : index
      %123 = vector.load %arg11[%c1_69, %c0_70, %c0_71] : memref<4x32x8xbf16, #tpu.memory_space<vmem>>, vector<1x32x8xbf16>
      %124 = vector.shape_cast %123 : vector<1x32x8xbf16> to vector<32x8xbf16>
      %125 = vector.shape_cast %122 : vector<32x8xbf16> to vector<1x32x8xbf16>
      tpu.vector_store %arg11[%c1_69, %c0_70, %c0_71], %125 {strides = array<i32>} : memref<4x32x8xbf16, #tpu.memory_space<vmem>>, vector<1x32x8xbf16>,
      %126 = vector.extract_strided_slice %107 {offsets = [16, 0], sizes = [8, 32], strides = [1, 1]} : vector<32x32xbf16> to vector<8x32xbf16>
      %c2_72 = arith.constant 2 : index
      %c0_73 = arith.constant 0 : index
      %c0_74 = arith.constant 0 : index
      %127 = vector.load %arg10[%c2_72, %c0_73, %c0_74] : memref<4x8x32xbf16, #tpu.memory_space<vmem>>, vector<1x8x32xbf16>
      %128 = vector.shape_cast %127 : vector<1x8x32xbf16> to vector<8x32xbf16>
      %129 = vector.shape_cast %126 : vector<8x32xbf16> to vector<1x8x32xbf16>
      tpu.vector_store %arg10[%c2_72, %c0_73, %c0_74], %129 {strides = array<i32>} : memref<4x8x32xbf16, #tpu.memory_space<vmem>>, vector<1x8x32xbf16>,
      %130 = vector.extract_strided_slice %109 {offsets = [0, 16], sizes = [32, 8], strides = [1, 1]} : vector<32x32xbf16> to vector<32x8xbf16>
      %c2_75 = arith.constant 2 : index
      %c0_76 = arith.constant 0 : index
      %c0_77 = arith.constant 0 : index
      %131 = vector.load %arg11[%c2_75, %c0_76, %c0_77] : memref<4x32x8xbf16, #tpu.memory_space<vmem>>, vector<1x32x8xbf16>
      %132 = vector.shape_cast %131 : vector<1x32x8xbf16> to vector<32x8xbf16>
      %133 = vector.shape_cast %130 : vector<32x8xbf16> to vector<1x32x8xbf16>
      tpu.vector_store %arg11[%c2_75, %c0_76, %c0_77], %133 {strides = array<i32>} : memref<4x32x8xbf16, #tpu.memory_space<vmem>>, vector<1x32x8xbf16>,
      %134 = vector.extract_strided_slice %107 {offsets = [24, 0], sizes = [8, 32], strides = [1, 1]} : vector<32x32xbf16> to vector<8x32xbf16>
      %c3_78 = arith.constant 3 : index
      %c0_79 = arith.constant 0 : index
      %c0_80 = arith.constant 0 : index
      %135 = vector.load %arg10[%c3_78, %c0_79, %c0_80] : memref<4x8x32xbf16, #tpu.memory_space<vmem>>, vector<1x8x32xbf16>
      %136 = vector.shape_cast %135 : vector<1x8x32xbf16> to vector<8x32xbf16>
      %137 = vector.shape_cast %134 : vector<8x32xbf16> to vector<1x8x32xbf16>
      tpu.vector_store %arg10[%c3_78, %c0_79, %c0_80], %137 {strides = array<i32>} : memref<4x8x32xbf16, #tpu.memory_space<vmem>>, vector<1x8x32xbf16>,
      %138 = vector.extract_strided_slice %109 {offsets = [0, 24], sizes = [32, 8], strides = [1, 1]} : vector<32x32xbf16> to vector<32x8xbf16>
      %c3_81 = arith.constant 3 : index
      %c0_82 = arith.constant 0 : index
      %c0_83 = arith.constant 0 : index
      %139 = vector.load %arg11[%c3_81, %c0_82, %c0_83] : memref<4x32x8xbf16, #tpu.memory_space<vmem>>, vector<1x32x8xbf16>
      %140 = vector.shape_cast %139 : vector<1x32x8xbf16> to vector<32x8xbf16>
      %141 = vector.shape_cast %138 : vector<32x8xbf16> to vector<1x32x8xbf16>
      tpu.vector_store %arg11[%c3_81, %c0_82, %c0_83], %141 {strides = array<i32>} : memref<4x32x8xbf16, #tpu.memory_space<vmem>>, vector<1x32x8xbf16>,
    } else {
    }
    %c16_i32 = arith.constant 16 : i32
    %3 = arith.muli %arg1, %c16_i32 : i32
    %4 = tpu.assume_multiple %3, 16 : i32
    %c0 = arith.constant 0 : index
    %5 = arith.index_cast %4 : i32 to index
    %c0_1 = arith.constant 0 : index
    %6 = vector.load %arg2[%c0, %5, %c0_1] : memref<1x32x32xbf16, #tpu.memory_space<vmem>>, vector<1x16x32xbf16>
    %7 = vector.shape_cast %6 : vector<1x16x32xbf16> to vector<16x32xbf16>
    %c0_2 = arith.constant 0 : index
    %c0_3 = arith.constant 0 : index
    %8 = vector.load %arg3[%c0_2, %c0_3] : memref<32x32xbf16, #tpu.memory_space<vmem>>, vector<32x32xbf16>
    %cst = arith.constant dense<0.000000e+00> : vector<16x32xf32>
    %9 = tpu.matmul %7, %8, %cst {dimension_numbers = #tpu.dot_dimension_numbers<[1], [0], [0], [1], [0, 0, 1, 1], [], []>} : vector<16x32xbf16>, vector<32x32xbf16>, vector<16x32xf32> -> vector<16x32xf32>
    %c0_4 = arith.constant 0 : index
    %c0_5 = arith.constant 0 : index
    %10 = vector.load %arg4[%c0_4, %c0_5] : memref<1x32xf32, #tpu.memory_space<vmem>>, vector<1x32xf32>
    %11 = vector.broadcast %10 : vector<1x32xf32> to vector<16x32xf32>
    %12 = arith.addf %9, %11 : vector<16x32xf32>
    %cst_6 = arith.constant 0.353553385 : f32
    %13 = vector.broadcast %cst_6 : f32 to vector<16x32xf32>
    %14 = arith.mulf %12, %13 : vector<16x32xf32>
    %15 = arith.truncf %14 : vector<16x32xf32> to vector<16x32xbf16>
    %16 = vector.extract_strided_slice %15 {offsets = [0, 0], sizes = [16, 8], strides = [1, 1]} : vector<16x32xbf16> to vector<16x8xbf16>
    %c0_7 = arith.constant 0 : index
    %c0_8 = arith.constant 0 : index
    %c0_9 = arith.constant 0 : index
    %17 = vector.load %arg10[%c0_7, %c0_8, %c0_9] : memref<4x8x32xbf16, #tpu.memory_space<vmem>>, vector<1x8x32xbf16>
    %18 = vector.shape_cast %17 : vector<1x8x32xbf16> to vector<8x32xbf16>
    %cst_10 = arith.constant dense<0.000000e+00> : vector<16x32xf32>
    %19 = tpu.matmul %16, %18, %cst_10 {dimension_numbers = #tpu.dot_dimension_numbers<[1], [0], [0], [1], [0, 0, 1, 1], [], []>} : vector<16x8xbf16>, vector<8x32xbf16>, vector<16x32xf32> -> vector<16x32xf32>
    %cst_11 = arith.constant dense<0xFF800000> : vector<16xf32>
    %20 = vector.multi_reduction <maximumf>, %19, %cst_11 [1] : vector<16x32xf32> to vector<16xf32>
    %21 = vector.shape_cast %20 : vector<16xf32> to vector<16x1xf32>
    %22 = vector.broadcast %21 : vector<16x1xf32> to vector<16x32xf32>
    %23 = arith.subf %19, %22 : vector<16x32xf32>
    %24 = math.exp %23 : vector<16x32xf32>
    %cst_12 = arith.constant dense<0.000000e+00> : vector<16xf32>
    %25 = vector.multi_reduction <add>, %24, %cst_12 [1] : vector<16x32xf32> to vector<16xf32>
    %26 = vector.shape_cast %25 : vector<16xf32> to vector<16x1xf32>
    %27 = tpu.reciprocal %26 {approx = true} : vector<16x1xf32> -> vector<16x1xf32>
    %28 = vector.broadcast %27 : vector<16x1xf32> to vector<16x32xf32>
    %29 = arith.mulf %24, %28 : vector<16x32xf32>
    %30 = arith.truncf %29 : vector<16x32xf32> to vector<16x32xbf16>
    %c0_13 = arith.constant 0 : index
    %c0_14 = arith.constant 0 : index
    %c0_15 = arith.constant 0 : index
    %31 = vector.load %arg11[%c0_13, %c0_14, %c0_15] : memref<4x32x8xbf16, #tpu.memory_space<vmem>>, vector<1x32x8xbf16>
    %32 = vector.shape_cast %31 : vector<1x32x8xbf16> to vector<32x8xbf16>
    %cst_16 = arith.constant dense<0.000000e+00> : vector<16x8xf32>
    %33 = tpu.matmul %30, %32, %cst_16 {dimension_numbers = #tpu.dot_dimension_numbers<[1], [0], [0], [1], [0, 0, 1, 1], [], []>} : vector<16x32xbf16>, vector<32x8xbf16>, vector<16x8xf32> -> vector<16x8xf32>
    %34 = vector.extract_strided_slice %15 {offsets = [0, 8], sizes = [16, 8], strides = [1, 1]} : vector<16x32xbf16> to vector<16x8xbf16>
    %c1 = arith.constant 1 : index
    %c0_17 = arith.constant 0 : index
    %c0_18 = arith.constant 0 : index
    %35 = vector.load %arg10[%c1, %c0_17, %c0_18] : memref<4x8x32xbf16, #tpu.memory_space<vmem>>, vector<1x8x32xbf16>
    %36 = vector.shape_cast %35 : vector<1x8x32xbf16> to vector<8x32xbf16>
    %cst_19 = arith.constant dense<0.000000e+00> : vector<16x32xf32>
    %37 = tpu.matmul %34, %36, %cst_19 {dimension_numbers = #tpu.dot_dimension_numbers<[1], [0], [0], [1], [0, 0, 1, 1], [], []>} : vector<16x8xbf16>, vector<8x32xbf16>, vector<16x32xf32> -> vector<16x32xf32>
    %cst_20 = arith.constant dense<0xFF800000> : vector<16xf32>
    %38 = vector.multi_reduction <maximumf>, %37, %cst_20 [1] : vector<16x32xf32> to vector<16xf32>
    %39 = vector.shape_cast %38 : vector<16xf32> to vector<16x1xf32>
    %40 = vector.broadcast %39 : vector<16x1xf32> to vector<16x32xf32>
    %41 = arith.subf %37, %40 : vector<16x32xf32>
    %42 = math.exp %41 : vector<16x32xf32>
    %cst_21 = arith.constant dense<0.000000e+00> : vector<16xf32>
    %43 = vector.multi_reduction <add>, %42, %cst_21 [1] : vector<16x32xf32> to vector<16xf32>
    %44 = vector.shape_cast %43 : vector<16xf32> to vector<16x1xf32>
    %45 = tpu.reciprocal %44 {approx = true} : vector<16x1xf32> -> vector<16x1xf32>
    %46 = vector.broadcast %45 : vector<16x1xf32> to vector<16x32xf32>
    %47 = arith.mulf %42, %46 : vector<16x32xf32>
    %48 = arith.truncf %47 : vector<16x32xf32> to vector<16x32xbf16>
    %c1_22 = arith.constant 1 : index
    %c0_23 = arith.constant 0 : index
    %c0_24 = arith.constant 0 : index
    %49 = vector.load %arg11[%c1_22, %c0_23, %c0_24] : memref<4x32x8xbf16, #tpu.memory_space<vmem>>, vector<1x32x8xbf16>
    %50 = vector.shape_cast %49 : vector<1x32x8xbf16> to vector<32x8xbf16>
    %cst_25 = arith.constant dense<0.000000e+00> : vector<16x8xf32>
    %51 = tpu.matmul %48, %50, %cst_25 {dimension_numbers = #tpu.dot_dimension_numbers<[1], [0], [0], [1], [0, 0, 1, 1], [], []>} : vector<16x32xbf16>, vector<32x8xbf16>, vector<16x8xf32> -> vector<16x8xf32>
    %52 = vector.extract_strided_slice %15 {offsets = [0, 16], sizes = [16, 8], strides = [1, 1]} : vector<16x32xbf16> to vector<16x8xbf16>
    %c2 = arith.constant 2 : index
    %c0_26 = arith.constant 0 : index
    %c0_27 = arith.constant 0 : index
    %53 = vector.load %arg10[%c2, %c0_26, %c0_27] : memref<4x8x32xbf16, #tpu.memory_space<vmem>>, vector<1x8x32xbf16>
    %54 = vector.shape_cast %53 : vector<1x8x32xbf16> to vector<8x32xbf16>
    %cst_28 = arith.constant dense<0.000000e+00> : vector<16x32xf32>
    %55 = tpu.matmul %52, %54, %cst_28 {dimension_numbers = #tpu.dot_dimension_numbers<[1], [0], [0], [1], [0, 0, 1, 1], [], []>} : vector<16x8xbf16>, vector<8x32xbf16>, vector<16x32xf32> -> vector<16x32xf32>
    %cst_29 = arith.constant dense<0xFF800000> : vector<16xf32>
    %56 = vector.multi_reduction <maximumf>, %55, %cst_29 [1] : vector<16x32xf32> to vector<16xf32>
    %57 = vector.shape_cast %56 : vector<16xf32> to vector<16x1xf32>
    %58 = vector.broadcast %57 : vector<16x1xf32> to vector<16x32xf32>
    %59 = arith.subf %55, %58 : vector<16x32xf32>
    %60 = math.exp %59 : vector<16x32xf32>
    %cst_30 = arith.constant dense<0.000000e+00> : vector<16xf32>
    %61 = vector.multi_reduction <add>, %60, %cst_30 [1] : vector<16x32xf32> to vector<16xf32>
    %62 = vector.shape_cast %61 : vector<16xf32> to vector<16x1xf32>
    %63 = tpu.reciprocal %62 {approx = true} : vector<16x1xf32> -> vector<16x1xf32>
    %64 = vector.broadcast %63 : vector<16x1xf32> to vector<16x32xf32>
    %65 = arith.mulf %60, %64 : vector<16x32xf32>
    %66 = arith.truncf %65 : vector<16x32xf32> to vector<16x32xbf16>
    %c2_31 = arith.constant 2 : index
    %c0_32 = arith.constant 0 : index
    %c0_33 = arith.constant 0 : index
    %67 = vector.load %arg11[%c2_31, %c0_32, %c0_33] : memref<4x32x8xbf16, #tpu.memory_space<vmem>>, vector<1x32x8xbf16>
    %68 = vector.shape_cast %67 : vector<1x32x8xbf16> to vector<32x8xbf16>
    %cst_34 = arith.constant dense<0.000000e+00> : vector<16x8xf32>
    %69 = tpu.matmul %66, %68, %cst_34 {dimension_numbers = #tpu.dot_dimension_numbers<[1], [0], [0], [1], [0, 0, 1, 1], [], []>} : vector<16x32xbf16>, vector<32x8xbf16>, vector<16x8xf32> -> vector<16x8xf32>
    %70 = vector.extract_strided_slice %15 {offsets = [0, 24], sizes = [16, 8], strides = [1, 1]} : vector<16x32xbf16> to vector<16x8xbf16>
    %c3 = arith.constant 3 : index
    %c0_35 = arith.constant 0 : index
    %c0_36 = arith.constant 0 : index
    %71 = vector.load %arg10[%c3, %c0_35, %c0_36] : memref<4x8x32xbf16, #tpu.memory_space<vmem>>, vector<1x8x32xbf16>
    %72 = vector.shape_cast %71 : vector<1x8x32xbf16> to vector<8x32xbf16>
    %cst_37 = arith.constant dense<0.000000e+00> : vector<16x32xf32>
    %73 = tpu.matmul %70, %72, %cst_37 {dimension_numbers = #tpu.dot_dimension_numbers<[1], [0], [0], [1], [0, 0, 1, 1], [], []>} : vector<16x8xbf16>, vector<8x32xbf16>, vector<16x32xf32> -> vector<16x32xf32>
    %cst_38 = arith.constant dense<0xFF800000> : vector<16xf32>
    %74 = vector.multi_reduction <maximumf>, %73, %cst_38 [1] : vector<16x32xf32> to vector<16xf32>
    %75 = vector.shape_cast %74 : vector<16xf32> to vector<16x1xf32>
    %76 = vector.broadcast %75 : vector<16x1xf32> to vector<16x32xf32>
    %77 = arith.subf %73, %76 : vector<16x32xf32>
    %78 = math.exp %77 : vector<16x32xf32>
    %cst_39 = arith.constant dense<0.000000e+00> : vector<16xf32>
    %79 = vector.multi_reduction <add>, %78, %cst_39 [1] : vector<16x32xf32> to vector<16xf32>
    %80 = vector.shape_cast %79 : vector<16xf32> to vector<16x1xf32>
    %81 = tpu.reciprocal %80 {approx = true} : vector<16x1xf32> -> vector<16x1xf32>
    %82 = vector.broadcast %81 : vector<16x1xf32> to vector<16x32xf32>
    %83 = arith.mulf %78, %82 : vector<16x32xf32>
    %84 = arith.truncf %83 : vector<16x32xf32> to vector<16x32xbf16>
    %c3_40 = arith.constant 3 : index
    %c0_41 = arith.constant 0 : index
    %c0_42 = arith.constant 0 : index
    %85 = vector.load %arg11[%c3_40, %c0_41, %c0_42] : memref<4x32x8xbf16, #tpu.memory_space<vmem>>, vector<1x32x8xbf16>
    %86 = vector.shape_cast %85 : vector<1x32x8xbf16> to vector<32x8xbf16>
    %cst_43 = arith.constant dense<0.000000e+00> : vector<16x8xf32>
    %87 = tpu.matmul %84, %86, %cst_43 {dimension_numbers = #tpu.dot_dimension_numbers<[1], [0], [0], [1], [0, 0, 1, 1], [], []>} : vector<16x32xbf16>, vector<32x8xbf16>, vector<16x8xf32> -> vector<16x8xf32>
    %88 = tpu.concatenate %33, %51, %69, %87 in 1 : vector<16x8xf32>, vector<16x8xf32>, vector<16x8xf32>, vector<16x8xf32> -> vector<16x32xf32>
    %89 = arith.truncf %88 : vector<16x32xf32> to vector<16x32xbf16>
    %c0_44 = arith.constant 0 : index
    %c0_45 = arith.constant 0 : index
    %90 = vector.load %arg7[%c0_44, %c0_45] : memref<32x32xbf16, #tpu.memory_space<vmem>>, vector<32x32xbf16>
    %cst_46 = arith.constant dense<0.000000e+00> : vector<16x32xf32>
    %91 = tpu.matmul %89, %90, %cst_46 {dimension_numbers = #tpu.dot_dimension_numbers<[1], [0], [0], [1], [0, 0, 1, 1], [], []>} : vector<16x32xbf16>, vector<32x32xbf16>, vector<16x32xf32> -> vector<16x32xf32>
    %c0_47 = arith.constant 0 : index
    %c0_48 = arith.constant 0 : index
    %92 = vector.load %arg8[%c0_47, %c0_48] : memref<1x32xf32, #tpu.memory_space<vmem>>, vector<1x32xf32>
    %93 = vector.broadcast %92 : vector<1x32xf32> to vector<16x32xf32>
    %94 = arith.addf %91, %93 : vector<16x32xf32>
    %c0_49 = arith.constant 0 : index
    %c0_50 = arith.constant 0 : index
    %c0_51 = arith.constant 0 : index
    %95 = vector.load %arg9[%c0_49, %c0_50, %c0_51] : memref<1x16x32xf32, #tpu.memory_space<vmem>>, vector<1x16x32xf32>
    %96 = vector.shape_cast %95 : vector<1x16x32xf32> to vector<16x32xf32>
    %97 = vector.shape_cast %94 : vector<16x32xf32> to vector<1x16x32xf32>
    tpu.vector_store %arg9[%c0_49, %c0_50, %c0_51], %97 {strides = array<i32>} : memref<1x16x32xf32, #tpu.memory_space<vmem>>, vector<1x16x32xf32>,
    return
  }
  func.func @transform_0(%arg0: i32, %arg1: i32) -> (i32, i32, i32) {
    %c0_i32 = arith.constant 0 : i32
    %c0_i32_0 = arith.constant 0 : i32
    %c0_i32_1 = arith.constant 0 : i32
    return %arg0, %c0_i32, %c0_i32_0 : i32, i32, i32
  }
  func.func @transform_1(%arg0: i32, %arg1: i32) -> (i32, i32) {
    %c0_i32 = arith.constant 0 : i32
    %c0_i32_0 = arith.constant 0 : i32
    %c0_i32_1 = arith.constant 0 : i32
    return %c0_i32, %c0_i32_0 : i32, i32
  }
  func.func @transform_2(%arg0: i32, %arg1: i32) -> (i32, i32) {
    %c0_i32 = arith.constant 0 : i32
    %c0_i32_0 = arith.constant 0 : i32
    %c0_i32_1 = arith.constant 0 : i32
    return %c0_i32, %c0_i32_0 : i32, i32
  }
  func.func @transform_3(%arg0: i32, %arg1: i32) -> (i32, i32) {
    %c0_i32 = arith.constant 0 : i32
    %c0_i32_0 = arith.constant 0 : i32
    %c0_i32_1 = arith.constant 0 : i32
    return %c0_i32, %c0_i32_0 : i32, i32
  }
  func.func @transform_4(%arg0: i32, %arg1: i32) -> (i32, i32) {
    %c0_i32 = arith.constant 0 : i32
    %c0_i32_0 = arith.constant 0 : i32
    %c0_i32_1 = arith.constant 0 : i32
    return %c0_i32, %c0_i32_0 : i32, i32
  }
  func.func @transform_5(%arg0: i32, %arg1: i32) -> (i32, i32) {
    %c0_i32 = arith.constant 0 : i32
    %c0_i32_0 = arith.constant 0 : i32
    %c0_i32_1 = arith.constant 0 : i32
    return %c0_i32, %c0_i32_0 : i32, i32
  }
  func.func @transform_6(%arg0: i32, %arg1: i32) -> (i32, i32) {
    %c0_i32 = arith.constant 0 : i32
    %c0_i32_0 = arith.constant 0 : i32
    %c0_i32_1 = arith.constant 0 : i32
    return %c0_i32, %c0_i32_0 : i32, i32
  }
  func.func @transform_7(%arg0: i32, %arg1: i32) -> (i32, i32, i32) {
    %c0_i32 = arith.constant 0 : i32
    %c0_i32_0 = arith.constant 0 : i32
    return %arg0, %arg1, %c0_i32 : i32, i32, i32
  }
}

</mosaic_0001>

<bundles_post_ra>
// kernel: tpu_custom_call.1
= control target key start
LH: loop header
LB: loop body
LE: loop exit
PB: predicated region body
PF: predicated region fallthrough
CT: control target
= control target key end

     0   :  { %s2368_s0 = inlined_call_operand.hbm [shape: bf16[2,32,32], index: 0, kind: input, shape index: {}]   ;;  %s2369_s1 = inlined_call_operand.hbm [shape: bf16[32,32], index: 1, kind: input, shape index: {}]   ;;  %s2370_s2 = inlined_call_operand.vmem [shape: f32[1,32], index: 2, kind: input, shape index: {}]   ;;  %s2371_s3 = inlined_call_operand.hbm [shape: bf16[32,64], index: 3, kind: input, shape index: {}]   ;;  %s2372_s4 = inlined_call_operand.vmem [shape: f32[1,64], index: 4, kind: input, shape index: {}]   ;;  %s2373_s5 = inlined_call_operand.vmem [shape: bf16[32,32], index: 5, kind: input, shape index: {}]   ;;  %s2374_s6 = inlined_call_operand.vmem [shape: f32[1,32], index: 6, kind: input, shape index: {}]   ;;  %s2375_s7 = inlined_call_operand.hbm [shape: f32[2,32,32], index: 7, kind: output, shape index: {}]  }
   0x1   :  { %2390 = sst [smem:[#allocation20_spill]] %s2369_s1 }
   0x2   :  { %2391 = sst [smem:[#allocation21_spill]] %s2371_s3 }
   0x3   :  { %2392 = sst [smem:[#allocation22_spill]] %s2374_s6 }
   0x4   :  { %2393 = sst [smem:[#allocation23_spill]] %s2375_s7 }
   0x5   :  { %12 = vsyncpa [#allocation5], 0 }
   0x6   :  { %14 = vsyncpa [#allocation5 + $0x1], 0 }
   0x7   :  { %15 = vsyncpa [#allocation8], 0 }
   0x8   :  { %16 = vsyncpa [#allocation6], 0 }
   0x9   :  { %18 = vsyncpa [#allocation6 + $0x1], 0  ;;  %s1951_s24 = smov 0   ;;  %s1953_s25 = smov 0  }
   0xa   :  { %s1955_s26 = smov 0   ;;  %s1957_s27 = smov 0  }
   0xb   :  { %s1959_s28 = smov 0   ;;  %s1961_s29 = smov 0  }
   0xc   :  { %s1963_s30 = smov 0   ;;  %s1965_s8 = smov 0  }
   0xd   :  { %s1967_s9 = smov 0   ;;  %s1969_s10 = smov 0  }
   0xe   :  { %s1971_s11 = smov 0  }
   0xf LB: > { %2394 = sst [smem:[#allocation14_spill]] %s1850_s24  ;;  %s1321_s12 = sadd.s32 4294967295, %s1890_s11   ;;  %s1890_s11 = sphi %s1971_s11, %s24_s11   ;;  %s1886_s10 = sphi %s1969_s10, %s2433_s10   ;;  %s1882_s9 = sphi %s1967_s9, %s2425_s9   ;;  %s1878_s8 = sphi %s1965_s8, %s2432_s8   ;;  %s1874_s30 = sphi %s1963_s30, %s2424_s30   ;;  %s1870_s29 = sphi %s1961_s29, %s2431_s29   ;;  %s1866_s28 = sphi %s1959_s28, %s2430_s28   ;;  %s1862_s27 = sphi %s1957_s27, %s2429_s27   ;;  %s1858_s26 = sphi %s1955_s26, %s2428_s26   ;;  %s1854_s25 = sphi %s1953_s25, %s2427_s25   ;;  %s1850_s24 = sphi %s1951_s24, %s2426_s24  }
  0x10   : > { %2395 = sst [smem:[#allocation15_spill]] %s1878_s8  ;;  %s1322_s13 = sadd.s32 4294967294, %s1890_s11  }
  0x11   : > { %2396 = sst [smem:[#allocation16_spill]] %s1882_s9  ;;  %p56_p0 = scmp.ne.s32.totalorder %s1866_s28, %s1862_s27 }
  0x12   : > { %p2007_p1 = scmp.eq.s32.totalorder %s1321_s12, 0  ;;  %p207_p2 = scmp.ne.s32.totalorder %s1858_s26, %s1854_s25 }
  0x13   : > { %p208_p4 = scmp.eq.s32.totalorder %s1321_s12, 3  ;;  %p213_p5 = scmp.ne.s32.totalorder %s1854_s25, %s1850_s24 }
  0x14   : > { %s2397_s14 = scalar_select %p2007_p1, 1, 0 }
  0x15   : > { %p2016_p3 = por %p2007_p1, %p56_p0  ;;  %p214_p6 = scmp.eq.s32.totalorder %s1322_s13, 3 }
  0x16   : > { %p2022_p7 = por %p208_p4, %p207_p2  ;;  %p1323_p8 = scmp.ge.s32.totalorder %s1890_s11, 1 }
  0x17   : > { %s2398_s16 = scalar_select %p2016_p3, 1, 0 }
  0x18   : > { %s2399_s17 = scalar_select %p2022_p7, 1, 0 }
  0x19   : > { %p2027_p9 = por %p214_p6, %p213_p5  ;;  %p221_p10 = scmp.lt.s32.totalorder %s1890_s11, 5 }
  0x1a   : > { %2400 = sst [smem:[#allocation17_spill]] %s2399_s17  ;;  %s1892_s20 = smov [#allocation7]  }
  0x1b   : > { %s2401_s18 = scalar_select %p2027_p9, 1, 0 }
  0x1c   : > { %p2032_p11 = pnand %p1323_p8, %p221_p10  ;;  %s233_s21 = sshll.u32 %s1892_s20, 4  ;;  %s234_s21 = int_to_ptr.vmem [resolvable:$true] %s233_s21 }
  0x1d   : > { %2402 = sst [smem:[#allocation18_spill]] %s2401_s18  ;;  %s1893_s23 = smov [#allocation9]  }
  0x1e   : > { %s2403_s19 = scalar_select %p2032_p11, 1, 0 }
  0x1f   : > { %p1495_p12 = pneg %p2032_p11  ;;  %s249_s27 = sshll.u32 %s1893_s23, 4  ;;  %s2044_s27 = int_to_ptr.vmem [resolvable:$true] %s249_s27 }
  0x20   : > { %s2405_s1 = sld [smem:[#allocation20_spill]] }
  0x21   : > { %p2040_p13 = pnand %p1495_p12, %p2007_p1 }
  0x23   : > { %p1680_p2 = pneg %p2040_p13 }
  0x26   : > { %s1678_s15 = scalar_lea.hbm %s2405_s1, 256 }
  0x27   : > { %p1679_p0 = scmp.ne.s32.totalorder %s2405_s1, %s1678_s15  ;;  %p1685_p6 = scmp.lt.u32.totalorder %s1678_s15, %s2405_s1 }
  0x29   : > { %p1681_p4 = pnand %p1680_p2, %p1679_p0 }
  0x2b   : > { %p1682_p5 = pneg %p1681_p4 }
  0x2d   : > { %p1687_p8 = pnand %p1685_p6, %p1682_p5 }
  0x2f   : > { %1690 = shalt.err (!%p1687_p8)
}
  0x30   : > { %s1691_s23 = scalar_lea.vmem %s234_s21, 256  ;;  %p1699_p7 = scmp.lt.s32.totalorder %s234_s21, %s234_s21 }
  0x31   : > { %p1692_p10 = scmp.ne.s32.totalorder %s234_s21, %s1691_s23  ;;  %p1700_p1 = scmp.lt.s32.totalorder %s1691_s23, %s1691_s23 }
  0x33   : > { %p1694_p12 = pnand %p1692_p10, %p1680_p2  ;;  %p1701_p3 = por %p1700_p1, %p1699_p7 }
  0x35   : > { %p1695_p9 = pneg %p1694_p12 }
  0x37   : > { %p1702_p11 = pnand %p1701_p3, %p1695_p9 }
  0x39   : > { %1705 = shalt.err (!%p1702_p11)
}
  0x3a   : > { %s2386_s18 = smov 64   ;;  %s2387_s12 = smov 4  }
  0x3b   : > { %1498 = dma.hbm_to_vmem [thread:$0]  (!%p2040_p13), %s2405_s1, 256, %s234_s21, [#allocation8], %s2386_s18, %s2386_s18, %s2387_s12  }
  0x3c   : > { %s2406_s3 = sld [smem:[#allocation21_spill]] }
  0x42   : > { %s1706_s20 = scalar_lea.hbm %s2406_s3, 256 }
  0x43   : > { %p1707_p1 = scmp.ne.s32.totalorder %s2406_s3, %s1706_s20  ;;  %p1713_p9 = scmp.lt.u32.totalorder %s1706_s20, %s2406_s3 }
  0x45   : > { %p1709_p3 = pnand %p1707_p1, %p1680_p2 }
  0x47   : > { %p1710_p7 = pneg %p1709_p3 }
  0x49   : > { %p1715_p11 = pnand %p1713_p9, %p1710_p7 }
  0x4b   : > { %1718 = shalt.err (!%p1715_p11)
}
  0x4c   : > { %s1719_s21 = scalar_lea.vmem %s2044_s27, 256  ;;  %p1727_p6 = scmp.lt.s32.totalorder %s2044_s27, %s2044_s27 }
  0x4d   : > { %p1720_p0 = scmp.ne.s32.totalorder %s2044_s27, %s1719_s21  ;;  %p1728_p8 = scmp.lt.s32.totalorder %s1719_s21, %s1719_s21 }
  0x4f   : > { %p1722_p4 = pnand %p1720_p0, %p1680_p2  ;;  %p1729_p10 = por %p1728_p8, %p1727_p6 }
  0x51   : > { %p1723_p5 = pneg %p1722_p4 }
  0x53   : > { %p1730_p12 = pnand %p1729_p10, %p1723_p5 }
  0x55   : > { %1733 = shalt.err (!%p1730_p12)
}
  0x56   : > { %1501 = dma.hbm_to_vmem [thread:$0]  (!%p2040_p13), %s2406_s3, 256, %s2044_s27, [#allocation8], %s2386_s18, %s2386_s18, %s2387_s12  }
  0x57   : > { %s33_s17 = sadd.s32 1, %s1882_s9  ;;  %s36_s22 = sadd.s32 1, %s1886_s10 }
  0x58   : > { %p34_p2 = scmp.ge.s32.totalorder %s33_s17, 2  ;;  %s43_s7 = sadd.s32 1, %s1870_s29 }
  0x59   : > { %p50_p1 = scmp.ne.s32.totalorder %s1870_s29, %s1866_s28  ;;  %p51_p3 = scmp.eq.s32.totalorder %s1890_s11, 0 }
  0x5a   : > { %s2435_s17 = smov (%p34_p2, %s33_s17), 0  ;;  %s2437_s22 = smov (!%p34_p2, %s36_s22), %s1886_s10 }
  0x5b   : > { %2407 = sst [smem:[#allocation19_spill]] %s2435_s17  ;;  %p2108_p7 = por %p51_p3, %p50_p1 }
  0x5c   : > { %s193_s15 = ssub.s32 %s1882_s9, %s2435_s17  ;;  %p38_p13 = scmp.ge.s32.totalorder %s2437_s22, 2 }
  0x5d   : > { %p1512_p9 = scmp.lt.s32.totalorder %s1890_s11, 4  ;;  %s272_s27 = sand.u32 1, %s1870_s29  }
  0x5e   : > { %s1370_s13 = sshll.u32 %s1886_s10, 8  ;;  %s2439_s22 = smov (%p38_p13, %s2437_s22), 0 }
  0x5f   : > { %s1327_s20 = sshll.u32 %s272_s27, 4  ;;  %s40_s23 = ssub.s32 %s1886_s10, %s2439_s22 }
  0x60   : > { %p41_p11 = scmp.eq.s32.totalorder %s40_s23, 0  ;;  %s194_s21 = sor.u32 %s193_s15, %s40_s23 }
  0x61   : > { %p195_p0 = scmp.eq.s32.totalorder %s194_s21, 0  ;;  %s2124_s18 = scalar_lea.hbm %s2368_s0, %s1370_s13 }
  0x62   : > { %s2127_s12 = scalar_select %p41_p11, %s1870_s29, %s43_s7  }
  0x63   : > { %s2409_s1 = sadd.s32 1, %s1858_s26  ;;  %s276_s17 = scalar_lea.vmem [#allocation4], %s1327_s20 }
  0x64   : > { %s2132_s3 = scalar_select %p195_p0, %s1858_s26, %s2409_s1  }
  0x65   : > { %s283_s9 = sshll.u32 %s276_s17, 4  ;;  %p2138_p4 = pnand %p1512_p9, %p2108_p7  ;;  %s2142_s9 = int_to_ptr.vmem [resolvable:$true] %s283_s9 }
  0x66   : > { %s2144_s13 = scalar_lea.sflag [#allocation5], %s272_s27  ;;  %s1734_s7 = scalar_lea.hbm %s2124_s18, 256 }
  0x67   : > { %p1735_p5 = scmp.ne.s32.totalorder %s2124_s18, %s1734_s7  ;;  %p1736_p6 = pneg %p2138_p4 }
  0x68   : > { %s1739_s24 = scalar_lea.hbm %s2368_s0, 512  ;;  %p1740_p12 = scmp.lt.u32.totalorder %s2124_s18, %s2368_s0 }
  0x69   : > { %p1737_p8 = pnand %p1736_p6, %p1735_p5  ;;  %p1741_p2 = scmp.lt.u32.totalorder %s1739_s24, %s1734_s7 }
  0x6a   : > { %p1743_p3 = scmp.lt.u32.totalorder %s1734_s7, %s2124_s18 }
  0x6b   : > { %p1738_p10 = pneg %p1737_p8  ;;  %p1742_p1 = por %p1741_p2, %p1740_p12 }
  0x6d   : > { %p1744_p7 = por %p1743_p3, %p1742_p1 }
  0x6f   : > { %p1745_p13 = pnand %p1744_p7, %p1738_p10 }
  0x71   : > { %1748 = shalt.err (!%p1745_p13)
}
  0x72   : > { %s1749_s27 = scalar_lea.vmem %s2142_s9, 256  ;;  %s1896_s21 = smov [#allocation4]  }
  0x73   : > { %p1750_p9 = scmp.ne.s32.totalorder %s2142_s9, %s1749_s27  ;;  %s1754_s6 = sshll.u32 %s1896_s21, 4  ;;  %s1755_s6 = int_to_ptr.vmem [resolvable:$false] %s1754_s6 }
  0x74   : > { %s1756_s8 = scalar_lea.vmem %s1755_s6, 512  ;;  %p1757_p5 = scmp.lt.s32.totalorder %s2142_s9, %s1755_s6 }
  0x75   : > { %p1752_p11 = pnand %p1750_p9, %p1736_p6  ;;  %p1758_p8 = scmp.lt.s32.totalorder %s1756_s8, %s1749_s27 }
  0x77   : > { %p1753_p0 = pneg %p1752_p11  ;;  %p1759_p12 = por %p1758_p8, %p1757_p5 }
  0x79   : > { %p1760_p2 = pnand %p1759_p12, %p1753_p0 }
  0x7b   : > { %1763 = shalt.err (!%p1760_p2)
}
  0x7c   : > { %s2411_s7 = smov 4   ;;  %s2412_s1 = smov 64  }
  0x7d   : > { %1505 = dma.hbm_to_vmem [thread:$0]  (!%p2138_p4), %s2124_s18, 256, %s2142_s9, %s2144_s13, %s2412_s1, %s2412_s1, %s2411_s7  }
  0x7e   : > { %p2413_p6 = scmp.ne.s32.totalorder %s2403_s19, 0 }
  0x7f   : > { %s297_s17 = sand.u32 (!%p2413_p6), 1, %s1866_s28   ;;  %p2414_p10 = scmp.ne.s32.totalorder (!%p2413_p6), %s2398_s16, 0 }
  0x80   : > { %295 = sbr.rel (%p2413_p6) target bundleno = 2010 (0x7da), region = 48  ;;  %s1331_s24 = sshll.u32 (!%p2413_p6), %s297_s17, 4 }
  0x81   : > { %s298_s20 = scalar_lea.sflag (!%p2413_p6), [#allocation5], %s297_s17  ;;  %s2178_s23 = scalar_lea.vmem (!%p2413_p6), [#allocation4], %s1331_s24 }
  0x87   : > { %1837 = dma.done.wait (%p2414_p10), %s298_s20, 256  }
  0x88   : > { %1839 = vsyncadd (%p2414_p10), %s298_s20, 4294967040  ;;  %p2415_p1 = scmp.ne.s32.totalorder %s2397_s14, 0 }
  0x8a   : > { %1841 = dma.done.wait (%p2415_p1), [#allocation8], 512  }
  0x8b   : > { %1843 = vsyncadd (%p2415_p1), [#allocation8], 4294966784  ;;  %s337_s9 = sand.u32 1, %s1854_s25   ;;  %p1335_p4 = scmp.ne.s32.totalorder %s1874_s30, 0 }
  0x8c   : > { %s1334_s19 = sshll.u32 %s337_s9, 4  ;;  %v1622_v0 = vld [vmem:[#allocation9] sm:$0xff] (!%p1335_p4)   ;;  %vm383_vm0 = vcmask (!%p1335_p4), 261120   ;;  %v1623_v1 = vld [vmem:[#allocation9 + $0x8] sm:$0xff] (!%p1335_p4)   ;;  %s1897_s15 = smov (!%p1335_p4), 88   ;;  %vm485_vm1 = vcmask (!%p1335_p4), 64512  }
  0x8d   : > { %s2191_s18 = scalar_lea.vmem [#allocation10], %s1334_s19  ;;  %345 = sbr.rel (%p1335_p4) target bundleno = 553 (0x229), region = 64  ;;  %1403 = vmatprep.subr.bf16.mxu0 (!%p1335_p4), %v1622_v0  ;;  %v1624_v2 = vld [vmem:[%s2178_s23] sm:$0xff] (!%p1335_p4)   ;;  %v1625_v3 = vld [vmem:[%s2178_s23 + $0x8] sm:$0xff] (!%p1335_p4)   ;;  %vm475_vm2 = vcmask (!%p1335_p4), 257024  }
  0x8e   : > { %1404 = vmatpush3.bf16.msra.mxu0 (!%p1335_p4), %v1622_v0  ;;  %1407 = vmatprep.mubr.msk.bf16.mxu0 (!%p1335_p4), %vm383_vm0, %v1624_v2  ;;  %v1336_v5 = vld [vmem:[%s2372_s4] ss:$0 sm:$0xff] (!%p1335_p4)  ;;  %s1898_s13 = smov (!%p1335_p4), 96   ;;  %s1899_s27 = smov (!%p1335_p4), 80  }
  0x8f   : > { %1405 = vmatprep.subr.bf16.mxu0 (!%p1335_p4), %v1623_v1  ;;  %s1900_s21 = smov (!%p1335_p4), 72  }
  0x92   : > { %1406 = vmatpush3.bf16.msra.mxu0 (!%p1335_p4), %v1623_v1 }
  0x95   : > { %1408 = vmatmul.mubr.msk.bf16.vlgmr.msra.gmra.mrb[0].mxu0 %vm383_vm0, %v1625_v3 }
 0x168   : > { %v1409_v4 = vpop.f32.mrb[0].mxu0 }
 0x169   : > { %v424_v6 = vpop.f32.mrb[1].mxu0  ;;  %v433_v8 = vadd.f32 %v1409_v4, %v1336_v5 }
 0x16a   : > { %v1410_v7 = vpop.f32.mrb[2].mxu0  ;;  %v425_v11 = vadd.f32 %v1336_v5, %v424_v6 }
 0x16b   : > { %v436_v9 = vadd.f32 %v1410_v7, %v1336_v5  ;;  %v427_v10 = vpop.f32.mrb[3].mxu0 }
 0x16c   : > { %v428_v12 = vadd.f32 %v1336_v5, %v427_v10 }
 0x16d   : > { %v474_v13 = vpack.c.bf16 %v436_v9, %v433_v8 }
 0x16e   : > { %v473_v14 = vpack.c.bf16 %v428_v12, %v425_v11 }
 0x16f   : > { %496 = vrot.lane.b32.xlu1 %v474_v13, %s1897_s15  ;;  %481 = vrot.lane.b32.xlu0 %v474_v13, %s1898_s13 }
 0x173   : > { %507 = vrot.lane.b32.xlu1 %v474_v13, %s1899_s27  ;;  %479 = vrot.lane.b32.xlu0 %v473_v14, %s1898_s13 }
 0x177   : > { %494 = vrot.lane.b32.xlu1 %v473_v14, %s1897_s15  ;;  %505 = vrot.lane.b32.xlu0 %v473_v14, %s1899_s27 }
 0x17b   : > { %522 = vrot.lane.b32.xlu1 %v474_v13, %s1900_s21  ;;  %520 = vrot.lane.b32.xlu0 %v473_v14, %s1900_s21 }
 0x199   : > { %439 = vxpose.xlu0.b32.start [1/4] (short) (narrow) %v425_v11, 32 }
 0x19d   : > { %440 = vxpose.xlu0.b32.cont [2/4] (short) (narrow) %v428_v12, 32 }
 0x1a1   : > { %441 = vxpose.xlu0.b32.cont [3/4] (short) (narrow) %v433_v8, 32 }
 0x1a5   : > { %442 = vxpose.xlu0.b32.end [4/4] (short) (narrow) %v436_v9, 32 }
 0x1e1   : > { %v497_v15 = vpop.permute.xlu1 %496  ;;  %v482_v16 = vpop.permute.xlu0 %481 }
 0x1e2   : > { %502 = vst.msk [vmem:[#allocation3 + $0x18] sm:$0xff] %vm485_vm1, %v497_v15  ;;  %487 = vst.msk [vmem:[#allocation3 + $0x8] sm:$0xff] %vm485_vm1, %v482_v16 }
 0x1e5   : > { %v508_v17 = vpop.permute.xlu1 %507  ;;  %v480_v18 = vpop.permute.xlu0 %479 }
 0x1e6   : > { %513 = vst.msk [vmem:[#allocation3 + $0x28] sm:$0xff] %vm485_vm1, %v508_v17  ;;  %486 = vst.msk [vmem:[#allocation3] sm:$0xff] %vm485_vm1, %v480_v18 }
 0x1e9   : > { %v495_v19 = vpop.permute.xlu1 %494  ;;  %v506_v20 = vpop.permute.xlu0 %505 }
 0x1ea   : > { %501 = vst.msk [vmem:[#allocation3 + $0x10] sm:$0xff] %vm485_vm1, %v495_v19  ;;  %512 = vst.msk [vmem:[#allocation3 + $0x20] sm:$0xff] %vm485_vm1, %v506_v20 }
 0x1ed   : > { %v523_v21 = vpop.permute.xlu1 %522  ;;  %v521_v22 = vpop.permute.xlu0 %520 }
 0x1ee   : > { %528 = vst.msk [vmem:[#allocation3 + $0x38] sm:$0xff] %vm485_vm1, %v523_v21  ;;  %527 = vst.msk [vmem:[#allocation3 + $0x30] sm:$0xff] %vm485_vm1, %v521_v22 }
 0x219   : > { %v455_v23 = vpop.trf.xlu0 }
 0x21d   : > { %v456_v24 = vpop.trf.xlu0 }
 0x21e   : > { %v471_v25 = vpack.c.bf16 %v456_v24, %v455_v23  ;;  %v1371_v26 = vpack.c.bf16 %v456_v24, %v456_v24 }
 0x220   : > { %476 = vst.msk [vmem:[#allocation2] sm:$0xf] %vm475_vm2, %v471_v25  ;;  %493 = vst.msk [vmem:[#allocation2 + $0x4] sm:$0xf] %vm475_vm2, %v1371_v26 }
 0x221   : > { %v457_v27 = vpop.trf.xlu0 }
 0x225   : > { %v458_v28 = vpop.trf.xlu0 }
 0x226   : > { %v472_v29 = vpack.c.bf16 %v458_v28, %v457_v27  ;;  %v1372_v30 = vpack.c.bf16 %v458_v28, %v458_v28 }
 0x228   : > { %504 = vst.msk [vmem:[#allocation2 + $0x8] sm:$0xf] %vm475_vm2, %v472_v29  ;;  %519 = vst.msk [vmem:[#allocation2 + $0xc] sm:$0xf] %vm475_vm2, %v1372_v30 }
 0x229 PF: > { %v1641_v31 = vld [vmem:[#allocation7] sm:$0xff]   ;;  %v1901_v32 = vmov 0.0   ;;  %v1642_v33 = vld [vmem:[#allocation7 + $0x8] sm:$0xff]   ;;  %vm1902_vm3 = vmmov 0   ;;  %s1345_s6 = sshll.u32 %s1874_s30, 4  ;;  %vm564_vm4 = vcmask 261120  }
 0x22a   : > { %1411 = vmatprep.subr.bf16.mxu0 %v1901_v32  ;;  %1419 = vmatprep.subr.bf16.mxu1 %v1901_v32  ;;  %s530_s8 = sshra.s32 %s1345_s6, 3  ;;  %v612_v35 = vld [vmem:[#allocation2] sm:$0xf]  ;;  %vm617_vm5 = vcmask 1043456   ;;  %v732_v37 = vld [vmem:[#allocation2 + $0x4] sm:$0xf] }
 0x22b   : > { %1412 = vmatpush3.bf16.msra.mxu0 %v1641_v31  ;;  %1415 = vmatprep.mubr.msk.bf16.mxu0 %vm1902_vm3, %v1901_v32  ;;  %s1346_s7 = sshll.u32 %s530_s8, 2  ;;  %v619_v36 = vsel %vm617_vm5, %v612_v35, 0  ;;  %v740_v38 = vsel %vm617_vm5, %v732_v37, 0  ;;  %v1347_v39 = vld [vmem:[%s2370_s2] ss:$0 sm:$0xff]  ;;  %vm613_vm6 = vcmask 64512  }
 0x22c   : > { %1413 = vmatprep.subr.bf16.mxu0 %v1901_v32  ;;  %1421 = vmatprep.mubr.msk.bf16.mxu1 %vm1902_vm3, %v1901_v32  ;;  %s533_s1 = scalar_lea.vmem %s2178_s23, %s1346_s7 [#allocation4]  ;;  %s1903_s20 = smov 104   ;;  %v685_v26 = vld [vmem:[#allocation3] sm:$0xff]  ;;  %v686_v27 = vld [vmem:[#allocation3 + $0x8] sm:$0xff]  ;;  %vm1121_vm7 = vcmask 130048   ;;  %vm1124_vm8 = vcmask 195584  }
 0x22d   : > { %v1643_v34 = vld [vmem:[%s533_s1] sm:$0xff]   ;;  %1420 = vmatpush3.bf16.msra.mxu1 %v619_v36  ;;  %s1904_s23 = smov 120   ;;  %s1905_s19 = smov 112  }
 0x22e   : > { %1425 = vmatprep.subr.bf16.mxu1 %v1901_v32  ;;  %s1906_s15 = smov 8   ;;  %s1907_s21 = smov 16  }
 0x22f   : > { %1414 = vmatpush3.bf16.msra.mxu0 %v1642_v33  ;;  %v854_v49 = vld [vmem:[#allocation2 + $0x8] sm:$0xf]  ;;  %v975_v52 = vld [vmem:[#allocation2 + $0xc] sm:$0xf]  ;;  %s1908_s6 = smov 24   ;;  %s2416_s8 = sld [smem:[#allocation15_spill]] }
 0x230   : > { %1433 = vmatprep.subr.bf16.mxu0 %v1901_v32  ;;  %v861_v50 = vsel %vm617_vm5, %v854_v49, 0  ;;  %v982_v53 = vsel %vm617_vm5, %v975_v52, 0  ;;  %s1365_s7 = sshll.u32 %s1874_s30, 1  ;;  %s1213_s16 = sshll.u32 %s2191_s18, 4  ;;  %s2300_s16 = int_to_ptr.vmem [resolvable:$true] %s1213_s16 }
 0x231   : > { %s2306_s30 = scalar_lea.sflag [#allocation6], %s337_s9 }
 0x232   : > { %1416 = vmatmul.mubr.msk.bf16.vlgmr.msra.gmra.mrb[0].mxu0 %vm564_vm4, %v1643_v34 }
 0x233   : > { %1435 = vmatprep.mubr.msk.bf16.mxu0 %vm1902_vm3, %v1901_v32  ;;  %1434 = vmatpush3.bf16.msra.mxu0 %v740_v38 }
 0x234   : > { %1447 = vmatprep.subr.bf16.mxu0 %v1901_v32 }
 0x235   : > { %s1366_s1 = sshll.u32 %s2416_s8, 2  ;;  %s1764_s8 = scalar_lea.vmem %s2300_s16, 256 }
 0x236   : > { %s1210_s17 = sadd.s32 %s1366_s1, %s1365_s7  ;;  %p1765_p3 = scmp.ne.s32.totalorder %s2300_s16, %s1764_s8 }
 0x237   : > { %s1367_s14 = sshll.u32 %s1210_s17, 7  ;;  %s1909_s7 = smov [#allocation10]  }
 0x238   : > { %s1768_s1 = sshll.u32 %s1909_s7, 4  ;;  %s1769_s1 = int_to_ptr.vmem [resolvable:$false] %s1768_s1 }
 0x239   : > { %s1770_s17 = scalar_lea.vmem %s1769_s1, 512  ;;  %p1771_p11 = scmp.lt.s32.totalorder %s2300_s16, %s1769_s1 }
 0x23a   : > { %p1772_p0 = scmp.lt.s32.totalorder %s1770_s17, %s1764_s8 }
 0x23c   : > { %p1773_p5 = por %p1772_p0, %p1771_p11 }
 0x305   : > { %v602_v40 = vpop.f32.mrb[0].mxu0 }
 0x306   : > { %v603_v41 = vadd.f32 %v1347_v39, %v602_v40  ;;  %v1417_v42 = vpop.f32.mrb[1].mxu0 }
 0x307   : > { %v605_v43 = vpop.f32.mrb[2].mxu0 }
 0x308   : > { %v606_v44 = vadd.f32 %v1347_v39, %v605_v43  ;;  %v1418_v45 = vpop.f32.mrb[3].mxu0  ;;  %v609_v46 = vmul.f32 0.35355338, %v603_v41 }
 0x30a   : > { %v610_v47 = vmul.f32 0.35355338, %v606_v44 }
 0x30c   : > { %v611_v48 = vpack.c.bf16 %v610_v47, %v609_v46 }
 0x30e   : > { %976 = vrot.lane.b32.xlu1 %v611_v48, %s1903_s20  ;;  %734 = vrot.lane.b32.xlu0 %v611_v48, %s1904_s23  ;;  %s2417_s23 = sld [smem:[#allocation22_spill]] }
 0x30f   : > { %1422 = vmatmul.mubr.msk.bf16.vlgmr.msra.gmra.mrb[0].mxu1 %vm613_vm6, %v611_v48 }
 0x310   : > { %1429 = vmatprep.mubr.msk.bf16.mxu1 %vm1902_vm3, %v1901_v32  ;;  %1426 = vmatpush3.bf16.msra.mxu1 %v685_v26 }
 0x311   : > { %1427 = vmatprep.subr.bf16.mxu1 %v1901_v32 }
 0x312   : > { %855 = vrot.lane.b32.xlu0 %v611_v48, %s1905_s19  ;;  %s2418_s19 = sld [smem:[#allocation17_spill]] }
 0x314   : > { %1428 = vmatpush3.bf16.msra.mxu1 %v686_v27 }
 0x315   : > { %1439 = vmatprep.subr.bf16.mxu1 %v1901_v32 }
 0x318   : > { %p2420_p7 = scmp.ne.s32.totalorder %s2418_s19, 0 }
 0x31a   : > { %p1766_p13 = pnand %p1765_p3, %p2420_p7 }
 0x31c   : > { %p1767_p9 = pneg %p1766_p13 }
 0x31e   : > { %p1774_p8 = pnand %p1773_p5, %p1767_p9 }
 0x380   : > { %v735_v51 = vpop.permute.xlu0 %734  ;;  %v977_v55 = vpop.permute.xlu1 %976 }
 0x381   : > { %1436 = vmatmul.mubr.msk.bf16.vlgmr.msra.gmra.mrb[4].mxu0 %vm613_vm6, %v735_v51 }
 0x382   : > { %1448 = vmatpush3.bf16.msra.mxu0 %v861_v50  ;;  %1449 = vmatprep.mubr.msk.bf16.mxu0 %vm1902_vm3, %v1901_v32 }
 0x383   : > { %1461 = vmatprep.subr.bf16.mxu0 %v1901_v32 }
 0x384   : > { %v856_v54 = vpop.permute.xlu0 %855 }
 0x389   : > { %1450 = vmatmul.mubr.msk.bf16.vlgmr.msra.gmra.mrb[8].mxu0 %vm613_vm6, %v856_v54 }
 0x38a   : > { %1462 = vmatpush3.bf16.msra.mxu0 %v982_v53  ;;  %1463 = vmatprep.mubr.msk.bf16.mxu0 %vm1902_vm3, %v1901_v32 }
 0x38b   : > { %1475 = vmatprep.subr.bf16.mxu0 %v1901_v32 }
 0x391   : > { %1464 = vmatmul.mubr.msk.bf16.vlgmr.msra.gmra.mrb[12].mxu0 %vm613_vm6, %v977_v55 }
 0x392   : > { %1479 = vmatprep.mubr.msk.bf16.mxu0 %vm1902_vm3, %v1901_v32 }
 0x3e2   : > { %v655_v56 = vpop.f32.mrb[0].mxu1 }
 0x3e3   : > { %v1423_v57 = vpop.f32.mrb[1].mxu1  ;;  %v662_v58 = vsel %vm564_vm4, %v655_v56, -inf }
 0x3e4   : > { %663 = vmax.xlane.f32.xlu1 %v662_v58  ;;  %v658_v59 = vpop.f32.mrb[2].mxu1 }
 0x3e5   : > { %v1424_v60 = vpop.f32.mrb[3].mxu1  ;;  %v665_v61 = vsel %vm564_vm4, %v658_v59, -inf }
 0x3e6   : > { %666 = vmax.xlane.f32.xlu0 %v665_v61 }
 0x454   : > { %v776_v62 = vpop.f32.mrb[4].mxu0 }
 0x455   : > { %v1437_v63 = vpop.f32.mrb[5].mxu0  ;;  %v783_v0 = vsel %vm564_vm4, %v776_v62, -inf }
 0x456   : > { %784 = vmax.xlane.f32.xlu0 %v783_v0  ;;  %v779_v1 = vpop.f32.mrb[6].mxu0 }
 0x457   : > { %v1438_v2 = vpop.f32.mrb[7].mxu0  ;;  %v786_v3 = vsel %vm564_vm4, %v779_v1, -inf }
 0x458   : > { %787 = vmax.xlane.f32.xlu1 %v786_v3  ;;  %v807_v2 = vld [vmem:[#allocation3 + $0x10] sm:$0xff]  ;;  %v808_v3 = vld [vmem:[#allocation3 + $0x18] sm:$0xff] }
 0x45c   : > { %v897_v4 = vpop.f32.mrb[8].mxu0 }
 0x45d   : > { %v1451_v5 = vpop.f32.mrb[9].mxu0  ;;  %v904_v6 = vsel %vm564_vm4, %v897_v4, -inf }
 0x45e   : > { %905 = vmax.xlane.f32.xlu0 %v904_v6  ;;  %v900_v7 = vpop.f32.mrb[10].mxu0 }
 0x45f   : > { %v1452_v8 = vpop.f32.mrb[11].mxu0  ;;  %v907_v9 = vsel %vm564_vm4, %v900_v7, -inf }
 0x460   : > { %908 = vmax.xlane.f32.xlu1 %v907_v9 }
 0x464   : > { %v1018_v10 = vpop.f32.mrb[12].mxu0 }
 0x465   : > { %v1465_v11 = vpop.f32.mrb[13].mxu0  ;;  %v1025_v12 = vsel %vm564_vm4, %v1018_v10, -inf }
 0x466   : > { %1026 = vmax.xlane.f32.xlu0 %v1025_v12  ;;  %v1021_v13 = vpop.f32.mrb[14].mxu0 }
 0x467   : > { %v1466_v14 = vpop.f32.mrb[15].mxu0  ;;  %v1028_v15 = vsel %vm564_vm4, %v1021_v13, -inf }
 0x468   : > { %1029 = vmax.xlane.f32.xlu1 %v1028_v15  ;;  %v928_v14 = vld [vmem:[#allocation3 + $0x20] sm:$0xff] }
 0x471   : > { %v664_v16 = vpop.xlane.xlu1 %663 }
 0x472   : > { %v668_v17 = vsub.f32 %v655_v56, %v664_v16 }
 0x473   : > { %v667_v18 = vpop.xlane.xlu0 %666 }
 0x474   : > { %v670_v19 = vmul.f32 1.442695, %v668_v17  ;;  %v669_v20 = vsub.f32 %v658_v59, %v667_v18  ;;  %v929_v17 = vld [vmem:[#allocation3 + $0x28] sm:$0xff] }
 0x476   : > { %1646 = vpow2.f32 %v670_v19  ;;  %v672_v21 = vmul.f32 1.442695, %v669_v20 }
 0x478   : > { %1648 = vpow2.f32 %v672_v21 }
 0x480   : > { %v1647_v22 = vpop.eup %1646 }
 0x481   : > { %v674_v23 = vsel %vm564_vm4, %v1647_v22, 0.0 }
 0x482   : > { %v1649_v24 = vpop.eup %1648  ;;  %675 = vadd.xlane.f32.xlu0 %v674_v23 }
 0x483   : > { %v677_v25 = vsel %vm564_vm4, %v1649_v24, 0.0 }
 0x484   : > { %678 = vadd.xlane.f32.xlu1 %v677_v25 }
 0x4e3   : > { %v785_v28 = vpop.xlane.xlu0 %784 }
 0x4e4   : > { %v789_v29 = vsub.f32 %v776_v62, %v785_v28 }
 0x4e5   : > { %v788_v30 = vpop.xlane.xlu1 %787 }
 0x4e6   : > { %v791_v31 = vmul.f32 1.442695, %v789_v29  ;;  %v790_v33 = vsub.f32 %v779_v1, %v788_v30 }
 0x4e8   : > { %1650 = vpow2.f32 %v791_v31  ;;  %v793_v34 = vmul.f32 1.442695, %v790_v33 }
 0x4ea   : > { %1652 = vpow2.f32 %v793_v34 }
 0x4eb   : > { %v906_v35 = vpop.xlane.xlu0 %905 }
 0x4ec   : > { %v910_v36 = vsub.f32 %v897_v4, %v906_v35 }
 0x4ed   : > { %v909_v37 = vpop.xlane.xlu1 %908 }
 0x4ee   : > { %v912_v38 = vmul.f32 1.442695, %v910_v36  ;;  %v911_v39 = vsub.f32 %v900_v7, %v909_v37  ;;  %v1644_v37 = vld [vmem:[%s2373_s5] sm:$0xff]  }
 0x4ef   : > { %1476 = vmatpush3.bf16.msra.mxu0 %v1644_v37 }
 0x4f0   : > { %1654 = vpow2.f32 %v912_v38  ;;  %v914_v40 = vmul.f32 1.442695, %v911_v39  ;;  %1477 = vmatprep.subr.bf16.mxu0 %v1901_v32 }
 0x4f2   : > { %v1651_v41 = vpop.eup %1650  ;;  %1656 = vpow2.f32 %v914_v40 }
 0x4f3   : > { %v1027_v42 = vpop.xlane.xlu0 %1026  ;;  %v795_v43 = vsel %vm564_vm4, %v1651_v41, 0.0 }
 0x4f4   : > { %v1653_v44 = vpop.eup %1652  ;;  %v1031_v45 = vsub.f32 %v1018_v10, %v1027_v42  ;;  %796 = vadd.xlane.f32.xlu0 %v795_v43  ;;  %v1645_v42 = vld [vmem:[%s2373_s5 + $0x8] sm:$0xff]  }
 0x4f5   : > { %v1030_v46 = vpop.xlane.xlu1 %1029  ;;  %v798_v47 = vsel %vm564_vm4, %v1653_v44, 0.0  ;;  %1478 = vmatpush3.bf16.msra.mxu0 %v1645_v42 }
 0x4f6   : > { %v1033_v48 = vmul.f32 1.442695, %v1031_v45  ;;  %v1032_v49 = vsub.f32 %v1021_v13, %v1030_v46  ;;  %799 = vadd.xlane.f32.xlu1 %v798_v47 }
 0x4f8   : > { %1658 = vpow2.f32 %v1033_v48  ;;  %v1035_v50 = vmul.f32 1.442695, %v1032_v49 }
 0x4fa   : > { %v1655_v51 = vpop.eup %1654  ;;  %1660 = vpow2.f32 %v1035_v50 }
 0x4fb   : > { %v916_v52 = vsel %vm564_vm4, %v1655_v51, 0.0 }
 0x4fc   : > { %v1657_v53 = vpop.eup %1656  ;;  %917 = vadd.xlane.f32.xlu0 %v916_v52 }
 0x4fd   : > { %v919_v54 = vsel %vm564_vm4, %v1657_v53, 0.0 }
 0x4fe   : > { %920 = vadd.xlane.f32.xlu1 %v919_v54 }
 0x502   : > { %v1659_v55 = vpop.eup %1658 }
 0x503   : > { %v1037_v56 = vsel %vm564_vm4, %v1659_v55, 0.0 }
 0x504   : > { %v1661_v57 = vpop.eup %1660  ;;  %1038 = vadd.xlane.f32.xlu0 %v1037_v56 }
 0x505   : > { %v1040_v58 = vsel %vm564_vm4, %v1661_v57, 0.0 }
 0x506   : > { %1041 = vadd.xlane.f32.xlu1 %v1040_v58 }
 0x50f   : > { %v676_v59 = vpop.xlane.xlu0 %675 }
 0x510   : > { %1662 = vrcp.f32 %v676_v59 }
 0x511   : > { %v679_v60 = vpop.xlane.xlu1 %678 }
 0x512   : > { %1664 = vrcp.f32 %v679_v60 }
 0x51a   : > { %v1663_v61 = vpop.eup %1662 }
 0x51b   : > { %v682_v63 = vmul.f32 %v1663_v61, %v1647_v22  ;;  %v1049_v22 = vld [vmem:[#allocation3 + $0x30] sm:$0xff] }
 0x51c   : > { %v1665_v62 = vpop.eup %1664 }
 0x51d   : > { %v683_v0 = vmul.f32 %v1665_v62, %v1649_v24  ;;  %v1050_v24 = vld [vmem:[#allocation3 + $0x38] sm:$0xff] }
 0x51f   : > { %v684_v1 = vpack.c.bf16 %v683_v0, %v682_v63 }
 0x521   : > { %1430 = vmatmul.mubr.msk.bf16.vlgmr.msra.gmra.mrb[4].mxu1 %vm564_vm4, %v684_v1 }
 0x522   : > { %1440 = vmatpush3.bf16.msra.mxu1 %v807_v2  ;;  %1443 = vmatprep.mubr.msk.bf16.mxu1 %vm1902_vm3, %v1901_v32  ;;  %v1360_v2 = vld [vmem:[%s2417_s23] ss:$0 sm:$0xff] }
 0x523   : > { %1441 = vmatprep.subr.bf16.mxu1 %v1901_v32 }
 0x526   : > { %1442 = vmatpush3.bf16.msra.mxu1 %v808_v3 }
 0x527   : > { %1453 = vmatprep.subr.bf16.mxu1 %v1901_v32 }
 0x581   : > { %v797_v4 = vpop.xlane.xlu0 %796 }
 0x582   : > { %1666 = vrcp.f32 %v797_v4 }
 0x583   : > { %v800_v5 = vpop.xlane.xlu1 %799 }
 0x584   : > { %1668 = vrcp.f32 %v800_v5 }
 0x589   : > { %v918_v6 = vpop.xlane.xlu0 %917 }
 0x58a   : > { %1670 = vrcp.f32 %v918_v6 }
 0x58b   : > { %v921_v7 = vpop.xlane.xlu1 %920 }
 0x58c   : > { %v1667_v8 = vpop.eup %1666  ;;  %1672 = vrcp.f32 %v921_v7 }
 0x58d   : > { %v803_v10 = vmul.f32 %v1667_v8, %v1651_v41 }
 0x58e   : > { %v1669_v9 = vpop.eup %1668 }
 0x58f   : > { %v804_v11 = vmul.f32 %v1669_v9, %v1653_v44 }
 0x591   : > { %v1039_v12 = vpop.xlane.xlu0 %1038  ;;  %v805_v13 = vpack.c.bf16 %v804_v11, %v803_v10 }
 0x592   : > { %1674 = vrcp.f32 %v1039_v12 }
 0x593   : > { %1444 = vmatmul.mubr.msk.bf16.vlgmr.msra.gmra.mrb[8].mxu1 %vm564_vm4, %v805_v13  ;;  %v1042_v15 = vpop.xlane.xlu1 %1041 }
 0x594   : > { %v1671_v16 = vpop.eup %1670  ;;  %1454 = vmatpush3.bf16.msra.mxu1 %v928_v14  ;;  %1676 = vrcp.f32 %v1042_v15  ;;  %1457 = vmatprep.mubr.msk.bf16.mxu1 %vm1902_vm3, %v1901_v32 }
 0x595   : > { %1455 = vmatprep.subr.bf16.mxu1 %v1901_v32  ;;  %v924_v19 = vmul.f32 %v1671_v16, %v1655_v51 }
 0x596   : > { %v1673_v18 = vpop.eup %1672 }
 0x597   : > { %v925_v20 = vmul.f32 %v1673_v18, %v1657_v53 }
 0x598   : > { %1456 = vmatpush3.bf16.msra.mxu1 %v929_v17 }
 0x599   : > { %1467 = vmatprep.subr.bf16.mxu1 %v1901_v32  ;;  %v926_v21 = vpack.c.bf16 %v925_v20, %v924_v19 }
 0x59b   : > { %1458 = vmatmul.mubr.msk.bf16.vlgmr.msra.gmra.mrb[12].mxu1 %vm564_vm4, %v926_v21 }
 0x59c   : > { %v1675_v23 = vpop.eup %1674  ;;  %1468 = vmatpush3.bf16.msra.mxu1 %v1049_v22  ;;  %1471 = vmatprep.mubr.msk.bf16.mxu1 %vm1902_vm3, %v1901_v32 }
 0x59d   : > { %1469 = vmatprep.subr.bf16.mxu1 %v1901_v32  ;;  %v1045_v26 = vmul.f32 %v1675_v23, %v1659_v55 }
 0x59e   : > { %v1677_v25 = vpop.eup %1676 }
 0x59f   : > { %v1046_v27 = vmul.f32 %v1677_v25, %v1661_v57 }
 0x5a0   : > { %1470 = vmatpush3.bf16.msra.mxu1 %v1050_v24 }
 0x5a1   : > { %v1047_v28 = vpack.c.bf16 %v1046_v27, %v1045_v26 }
 0x5a3   : > { %1472 = vmatmul.mubr.msk.bf16.vlgmr.msra.gmra.mrb[16].mxu1 %vm564_vm4, %v1047_v28 }
 0x5f4   : > { %v724_v29 = vpop.f32.mrb[4].mxu1 }
 0x5f5   : > { %v1431_v30 = vpop.f32.mrb[5].mxu1 }
 0x5f6   : > { %v727_v31 = vpop.f32.mrb[6].mxu1 }
 0x5f7   : > { %v1432_v33 = vpop.f32.mrb[7].mxu1 }
 0x666   : > { %v846_v34 = vpop.f32.mrb[8].mxu1 }
 0x667   : > { %v1445_v35 = vpop.f32.mrb[9].mxu1 }
 0x668   : > { %v849_v36 = vpop.f32.mrb[10].mxu1 }
 0x669   : > { %v1626_v38 = vpack.i.bf16 %v849_v36, %v846_v34  ;;  %v1446_v39 = vpop.f32.mrb[11].mxu1 }
 0x66b   : > { %1627 = vrot.lane.b32.xlu0 %v1626_v38, %s1906_s15 }
 0x66e   : > { %v967_v40 = vpop.f32.mrb[12].mxu1 }
 0x66f   : > { %v1459_v41 = vpop.f32.mrb[13].mxu1 }
 0x670   : > { %v970_v43 = vpop.f32.mrb[14].mxu1 }
 0x671   : > { %v1631_v44 = vpack.i.bf16 %v970_v43, %v967_v40  ;;  %v1460_v45 = vpop.f32.mrb[15].mxu1 }
 0x673   : > { %1632 = vrot.lane.b32.xlu1 %v1631_v44, %s1907_s21  ;;  %s2419_s21 = sld [smem:[#allocation23_spill]] }
 0x676   : > { %v1088_v46 = vpop.f32.mrb[16].mxu1 }
 0x677   : > { %v1473_v47 = vpop.f32.mrb[17].mxu1 }
 0x678   : > { %v1091_v48 = vpop.f32.mrb[18].mxu1 }
 0x679   : > { %v1636_v49 = vpack.i.bf16 %v1091_v48, %v1088_v46  ;;  %v1474_v50 = vpop.f32.mrb[19].mxu1 }
 0x67b   : > { %1637 = vrot.lane.b32.xlu1 %v1636_v49, %s1908_s6  ;;  %s2296_s6 = scalar_lea.hbm %s2419_s21, %s1367_s14 }
 0x6dd   : > { %v1628_v32 = vpop.permute.xlu0 %1627 }
 0x6de   : > { %v1630_v52 = vunpack.i.h.bf16 %v1628_v32  ;;  %v1629_v53 = vunpack.i.l.bf16 %v1628_v32 }
 0x6e0   : > { %v1120_v57 = vsel %vm613_vm6, %v727_v31, %v1630_v52  ;;  %v1119_v58 = vsel %vm613_vm6, %v724_v29, %v1629_v53 }
 0x6e5   : > { %v1633_v51 = vpop.permute.xlu1 %1632 }
 0x6e6   : > { %v1635_v54 = vunpack.i.h.bf16 %v1633_v51  ;;  %v1634_v55 = vunpack.i.l.bf16 %v1633_v51 }
 0x6e8   : > { %v1123_v61 = vsel %vm1121_vm7, %v1120_v57, %v1635_v54  ;;  %v1122_v62 = vsel %vm1121_vm7, %v1119_v58, %v1634_v55 }
 0x6ed   : > { %v1638_v56 = vpop.permute.xlu1 %1637 }
 0x6ee   : > { %v1640_v59 = vunpack.i.h.bf16 %v1638_v56  ;;  %v1639_v60 = vunpack.i.l.bf16 %v1638_v56 }
 0x6f0   : > { %v1125_v63 = vsel %vm1124_vm8, %v1122_v62, %v1639_v60  ;;  %v1126_v0 = vsel %vm1124_vm8, %v1123_v61, %v1640_v59 }
 0x6f1   : > { %v1127_v1 = vpack.c.bf16 %v1126_v0, %v1125_v63 }
 0x6f3   : > { %1480 = vmatmul.mubr.msk.bf16.vlgmr.msra.gmra.mrb[16].mxu0 %vm564_vm4, %v1127_v1 }
 0x7c6   : > { %v1188_v3 = vpop.f32.mrb[16].mxu0 }
 0x7c7   : > { %v1189_v4 = vadd.f32 %v1360_v2, %v1188_v3  ;;  %v1481_v5 = vpop.f32.mrb[17].mxu0 }
 0x7c8   : > { %v1191_v6 = vpop.f32.mrb[18].mxu0 }
 0x7c9   : > { %1195 = vst.msk [vmem:[%s2191_s18] sm:$0xff] %vm564_vm4, %v1189_v4  ;;  %v1192_v7 = vadd.f32 %v1360_v2, %v1191_v6  ;;  %v1482_v8 = vpop.f32.mrb[19].mxu0 }
 0x7cb   : > { %1196 = vst.msk [vmem:[%s2191_s18 + $0x8] sm:$0xff] %vm564_vm4, %v1192_v7 }
 0x7cc   : > { %1777 = shalt.err (!%p1774_p8)
}
 0x7cd   : > { %s1778_s9 = scalar_lea.hbm %s2296_s6, 256  ;;  %s1782_s20 = scalar_lea.hbm %s2419_s21, 1024 }
 0x7ce   : > { %p1779_p12 = scmp.ne.s32.totalorder %s2296_s6, %s1778_s9  ;;  %p1783_p10 = scmp.lt.u32.totalorder %s2296_s6, %s2419_s21 }
 0x7cf   : > { %p1784_p1 = scmp.lt.u32.totalorder %s1782_s20, %s1778_s9  ;;  %p1786_p3 = scmp.lt.u32.totalorder %s1778_s9, %s2296_s6 }
 0x7d0   : > { %p1780_p2 = pnand %p1779_p12, %p2420_p7 }
 0x7d1   : > { %p1785_p4 = por %p1784_p1, %p1783_p10 }
 0x7d2   : > { %p1781_p6 = pneg %p1780_p2 }
 0x7d3   : > { %p1787_p13 = por %p1786_p3, %p1785_p4 }
 0x7d5   : > { %p1788_p9 = pnand %p1787_p13, %p1781_p6 }
 0x7d7   : > { %1791 = shalt.err (!%p1788_p9)
}
 0x7d8   : > { %s1910_s13 = smov 128  }
 0x7d9   : > { %1493 = dma.vmem_to_hbm [thread:$0]  (%p2420_p7), %s2300_s16, 256, %s2296_s6, %s2306_s30, %s1910_s13, %s1910_s13, %s1906_s15  }
 0x7da PF: > { %s2421_s27 = sld [smem:[#allocation14_spill]]  ;;  %s2422_s8 = sld [smem:[#allocation18_spill]] }
 0x7db   : > { %p1515_p11 = scmp.ge.s32.totalorder %s1890_s11, 2 }
 0x7e0   : > { %s1228_s7 = sand.u32 1, %s2421_s27   ;;  %p2423_p0 = scmp.ne.s32.totalorder %s2422_s8, 0 }
 0x7e1   : > { %s1229_s1 = scalar_lea.sflag [#allocation6], %s1228_s7 }
 0x7e2   : > { %p1507_p5 = pnand %p1515_p11, %p2423_p0 }
 0x7e4   : > { %1845 = dma.done.wait (!%p1507_p5), %s1229_s1, 256  }
 0x7e5   : > { %1847 = vsyncadd (!%p1507_p5), %s1229_s1, 4294967040  ;;  %s24_s11 = sadd.s32 1, %s1890_s11   ;;  %s2424_s30 = sld [smem:[#allocation16_spill]] }
 0x7e6   : > { %p21_p8 = scmp.ge.s32.totalorder %s24_s11, 6   ;;  %s2425_s9 = sld [smem:[#allocation19_spill]] }
 0x7e7   : > { %s2426_s24 = smov %s1854_s25  ;;  %s2427_s25 = smov %s1858_s26 }
 0x7e8   : > { %s2428_s26 = smov %s2132_s3  ;;  %s2429_s27 = smov %s1866_s28 }
 0x7e9   : > { %s2430_s28 = smov %s1870_s29  ;;  %s2431_s29 = smov %s2127_s12 }
 0x7ea   : > { %s2432_s8 = smov %s1886_s10  ;;  %s2433_s10 = smov %s2439_s22 }
 0x7eb   :  { %23 = sbr.rel (!%p21_p8) target bundleno = 15 (0xf), region = 118 }
 0x7f2   :  { %1234 = vsyncpa [#allocation5], 1 }
 0x7f3   :  { %1236 = vsyncpa [#allocation5 + $0x1], 1 }
 0x7f4   :  { %1237 = vsyncpa [#allocation8], 1 }
 0x7f5   :  { %1238 = vsyncpa [#allocation6], 1 }
 0x7f6   :  { %1240 = vsyncpa [#allocation6 + $0x1], 1 }

// kernel: tpu_custom_call.1
= control target key start
LH: loop header
LB: loop body
LE: loop exit
PB: predicated region body
PF: predicated region fallthrough
CT: control target
= control target key end

     0   :  { %s2368_s0 = inlined_call_operand.hbm [shape: bf16[2,32,32], index: 0, kind: input, shape index: {}]   ;;  %s2369_s1 = inlined_call_operand.hbm [shape: bf16[32,32], index: 1, kind: input, shape index: {}]   ;;  %s2370_s2 = inlined_call_operand.vmem [shape: f32[1,32], index: 2, kind: input, shape index: {}]   ;;  %s2371_s3 = inlined_call_operand.hbm [shape: bf16[32,64], index: 3, kind: input, shape index: {}]   ;;  %s2372_s4 = inlined_call_operand.vmem [shape: f32[1,64], index: 4, kind: input, shape index: {}]   ;;  %s2373_s5 = inlined_call_operand.vmem [shape: bf16[32,32], index: 5, kind: input, shape index: {}]   ;;  %s2374_s6 = inlined_call_operand.vmem [shape: f32[1,32], index: 6, kind: input, shape index: {}]   ;;  %s2375_s7 = inlined_call_operand.hbm [shape: f32[2,32,32], index: 7, kind: output, shape index: {}]  }
   0x1   :  { %2390 = sst [smem:[#allocation20_spill]] %s2369_s1 }
   0x2   :  { %2391 = sst [smem:[#allocation21_spill]] %s2371_s3 }
   0x3   :  { %2392 = sst [smem:[#allocation22_spill]] %s2374_s6 }
   0x4   :  { %2393 = sst [smem:[#allocation23_spill]] %s2375_s7 }
   0x5   :  { %12 = vsyncpa [#allocation5], 0 }
   0x6   :  { %14 = vsyncpa [#allocation5 + $0x1], 0 }
   0x7   :  { %15 = vsyncpa [#allocation8], 0 }
   0x8   :  { %16 = vsyncpa [#allocation6], 0 }
   0x9   :  { %18 = vsyncpa [#allocation6 + $0x1], 0  ;;  %s1951_s24 = smov 0   ;;  %s1953_s25 = smov 0  }
   0xa   :  { %s1955_s26 = smov 0   ;;  %s1957_s27 = smov 0  }
   0xb   :  { %s1959_s28 = smov 0   ;;  %s1961_s29 = smov 0  }
   0xc   :  { %s1963_s30 = smov 0   ;;  %s1965_s8 = smov 0  }
   0xd   :  { %s1967_s9 = smov 0   ;;  %s1969_s10 = smov 0  }
   0xe   :  { %s1971_s11 = smov 0  }
   0xf LB: > { %2394 = sst [smem:[#allocation14_spill]] %s1850_s24  ;;  %s1321_s12 = sadd.s32 4294967295, %s1890_s11   ;;  %s1890_s11 = sphi %s1971_s11, %s24_s11   ;;  %s1886_s10 = sphi %s1969_s10, %s2433_s10   ;;  %s1882_s9 = sphi %s1967_s9, %s2425_s9   ;;  %s1878_s8 = sphi %s1965_s8, %s2432_s8   ;;  %s1874_s30 = sphi %s1963_s30, %s2424_s30   ;;  %s1870_s29 = sphi %s1961_s29, %s2431_s29   ;;  %s1866_s28 = sphi %s1959_s28, %s2430_s28   ;;  %s1862_s27 = sphi %s1957_s27, %s2429_s27   ;;  %s1858_s26 = sphi %s1955_s26, %s2428_s26   ;;  %s1854_s25 = sphi %s1953_s25, %s2427_s25   ;;  %s1850_s24 = sphi %s1951_s24, %s2426_s24  }
  0x10   : > { %2395 = sst [smem:[#allocation15_spill]] %s1878_s8  ;;  %s1322_s13 = sadd.s32 4294967294, %s1890_s11  }
  0x11   : > { %2396 = sst [smem:[#allocation16_spill]] %s1882_s9  ;;  %p56_p0 = scmp.ne.s32.totalorder %s1866_s28, %s1862_s27 }
  0x12   : > { %p2007_p1 = scmp.eq.s32.totalorder %s1321_s12, 0  ;;  %p207_p2 = scmp.ne.s32.totalorder %s1858_s26, %s1854_s25 }
  0x13   : > { %p208_p4 = scmp.eq.s32.totalorder %s1321_s12, 3  ;;  %p213_p5 = scmp.ne.s32.totalorder %s1854_s25, %s1850_s24 }
  0x14   : > { %s2397_s14 = scalar_select %p2007_p1, 1, 0 }
  0x15   : > { %p2016_p3 = por %p2007_p1, %p56_p0  ;;  %p214_p6 = scmp.eq.s32.totalorder %s1322_s13, 3 }
  0x16   : > { %p2022_p7 = por %p208_p4, %p207_p2  ;;  %p1323_p8 = scmp.ge.s32.totalorder %s1890_s11, 1 }
  0x17   : > { %s2398_s16 = scalar_select %p2016_p3, 1, 0 }
  0x18   : > { %s2399_s17 = scalar_select %p2022_p7, 1, 0 }
  0x19   : > { %p2027_p9 = por %p214_p6, %p213_p5  ;;  %p221_p10 = scmp.lt.s32.totalorder %s1890_s11, 5 }
  0x1a   : > { %2400 = sst [smem:[#allocation17_spill]] %s2399_s17  ;;  %s1892_s20 = smov [#allocation7]  }
  0x1b   : > { %s2401_s18 = scalar_select %p2027_p9, 1, 0 }
  0x1c   : > { %p2032_p11 = pnand %p1323_p8, %p221_p10  ;;  %s233_s21 = sshll.u32 %s1892_s20, 4  ;;  %s234_s21 = int_to_ptr.vmem [resolvable:$true] %s233_s21 }
  0x1d   : > { %2402 = sst [smem:[#allocation18_spill]] %s2401_s18  ;;  %s1893_s23 = smov [#allocation9]  }
  0x1e   : > { %s2403_s19 = scalar_select %p2032_p11, 1, 0 }
  0x1f   : > { %p1495_p12 = pneg %p2032_p11  ;;  %s249_s27 = sshll.u32 %s1893_s23, 4  ;;  %s2044_s27 = int_to_ptr.vmem [resolvable:$true] %s249_s27 }
  0x20   : > { %s2405_s1 = sld [smem:[#allocation20_spill]] }
  0x21   : > { %p2040_p13 = pnand %p1495_p12, %p2007_p1 }
  0x23   : > { %p1680_p2 = pneg %p2040_p13 }
  0x26   : > { %s1678_s15 = scalar_lea.hbm %s2405_s1, 256 }
  0x27   : > { %p1679_p0 = scmp.ne.s32.totalorder %s2405_s1, %s1678_s15  ;;  %p1685_p6 = scmp.lt.u32.totalorder %s1678_s15, %s2405_s1 }
  0x29   : > { %p1681_p4 = pnand %p1680_p2, %p1679_p0 }
  0x2b   : > { %p1682_p5 = pneg %p1681_p4 }
  0x2d   : > { %p1687_p8 = pnand %p1685_p6, %p1682_p5 }
  0x2f   : > { %1690 = shalt.err (!%p1687_p8)
}
  0x30   : > { %s1691_s23 = scalar_lea.vmem %s234_s21, 256  ;;  %p1699_p7 = scmp.lt.s32.totalorder %s234_s21, %s234_s21 }
  0x31   : > { %p1692_p10 = scmp.ne.s32.totalorder %s234_s21, %s1691_s23  ;;  %p1700_p1 = scmp.lt.s32.totalorder %s1691_s23, %s1691_s23 }
  0x33   : > { %p1694_p12 = pnand %p1692_p10, %p1680_p2  ;;  %p1701_p3 = por %p1700_p1, %p1699_p7 }
  0x35   : > { %p1695_p9 = pneg %p1694_p12 }
  0x37   : > { %p1702_p11 = pnand %p1701_p3, %p1695_p9 }
  0x39   : > { %1705 = shalt.err (!%p1702_p11)
}
  0x3a   : > { %s2386_s18 = smov 64   ;;  %s2387_s12 = smov 4  }
  0x3b   : > { %1498 = dma.hbm_to_vmem [thread:$0]  (!%p2040_p13), %s2405_s1, 256, %s234_s21, [#allocation8], %s2386_s18, %s2386_s18, %s2387_s12  }
  0x3c   : > { %s2406_s3 = sld [smem:[#allocation21_spill]] }
  0x42   : > { %s1706_s20 = scalar_lea.hbm %s2406_s3, 256 }
  0x43   : > { %p1707_p1 = scmp.ne.s32.totalorder %s2406_s3, %s1706_s20  ;;  %p1713_p9 = scmp.lt.u32.totalorder %s1706_s20, %s2406_s3 }
  0x45   : > { %p1709_p3 = pnand %p1707_p1, %p1680_p2 }
  0x47   : > { %p1710_p7 = pneg %p1709_p3 }
  0x49   : > { %p1715_p11 = pnand %p1713_p9, %p1710_p7 }
  0x4b   : > { %1718 = shalt.err (!%p1715_p11)
}
  0x4c   : > { %s1719_s21 = scalar_lea.vmem %s2044_s27, 256  ;;  %p1727_p6 = scmp.lt.s32.totalorder %s2044_s27, %s2044_s27 }
  0x4d   : > { %p1720_p0 = scmp.ne.s32.totalorder %s2044_s27, %s1719_s21  ;;  %p1728_p8 = scmp.lt.s32.totalorder %s1719_s21, %s1719_s21 }
  0x4f   : > { %p1722_p4 = pnand %p1720_p0, %p1680_p2  ;;  %p1729_p10 = por %p1728_p8, %p1727_p6 }
  0x51   : > { %p1723_p5 = pneg %p1722_p4 }
  0x53   : > { %p1730_p12 = pnand %p1729_p10, %p1723_p5 }
  0x55   : > { %1733 = shalt.err (!%p1730_p12)
}
  0x56   : > { %1501 = dma.hbm_to_vmem [thread:$0]  (!%p2040_p13), %s2406_s3, 256, %s2044_s27, [#allocation8], %s2386_s18, %s2386_s18, %s2387_s12  }
  0x57   : > { %s33_s17 = sadd.s32 1, %s1882_s9  ;;  %s36_s22 = sadd.s32 1, %s1886_s10 }
  0x58   : > { %p34_p2 = scmp.ge.s32.totalorder %s33_s17, 2  ;;  %s43_s7 = sadd.s32 1, %s1870_s29 }
  0x59   : > { %p50_p1 = scmp.ne.s32.totalorder %s1870_s29, %s1866_s28  ;;  %p51_p3 = scmp.eq.s32.totalorder %s1890_s11, 0 }
  0x5a   : > { %s2435_s17 = smov (%p34_p2, %s33_s17), 0  ;;  %s2437_s22 = smov (!%p34_p2, %s36_s22), %s1886_s10 }
  0x5b   : > { %2407 = sst [smem:[#allocation19_spill]] %s2435_s17  ;;  %p2108_p7 = por %p51_p3, %p50_p1 }
  0x5c   : > { %s193_s15 = ssub.s32 %s1882_s9, %s2435_s17  ;;  %p38_p13 = scmp.ge.s32.totalorder %s2437_s22, 2 }
  0x5d   : > { %p1512_p9 = scmp.lt.s32.totalorder %s1890_s11, 4  ;;  %s272_s27 = sand.u32 1, %s1870_s29  }
  0x5e   : > { %s1370_s13 = sshll.u32 %s1886_s10, 8  ;;  %s2439_s22 = smov (%p38_p13, %s2437_s22), 0 }
  0x5f   : > { %s1327_s20 = sshll.u32 %s272_s27, 4  ;;  %s40_s23 = ssub.s32 %s1886_s10, %s2439_s22 }
  0x60   : > { %p41_p11 = scmp.eq.s32.totalorder %s40_s23, 0  ;;  %s194_s21 = sor.u32 %s193_s15, %s40_s23 }
  0x61   : > { %p195_p0 = scmp.eq.s32.totalorder %s194_s21, 0  ;;  %s2124_s18 = scalar_lea.hbm %s2368_s0, %s1370_s13 }
  0x62   : > { %s2127_s12 = scalar_select %p41_p11, %s1870_s29, %s43_s7  }
  0x63   : > { %s2409_s1 = sadd.s32 1, %s1858_s26  ;;  %s276_s17 = scalar_lea.vmem [#allocation4], %s1327_s20 }
  0x64   : > { %s2132_s3 = scalar_select %p195_p0, %s1858_s26, %s2409_s1  }
  0x65   : > { %s283_s9 = sshll.u32 %s276_s17, 4  ;;  %p2138_p4 = pnand %p1512_p9, %p2108_p7  ;;  %s2142_s9 = int_to_ptr.vmem [resolvable:$true] %s283_s9 }
  0x66   : > { %s2144_s13 = scalar_lea.sflag [#allocation5], %s272_s27  ;;  %s1734_s7 = scalar_lea.hbm %s2124_s18, 256 }
  0x67   : > { %p1735_p5 = scmp.ne.s32.totalorder %s2124_s18, %s1734_s7  ;;  %p1736_p6 = pneg %p2138_p4 }
  0x68   : > { %s1739_s24 = scalar_lea.hbm %s2368_s0, 512  ;;  %p1740_p12 = scmp.lt.u32.totalorder %s2124_s18, %s2368_s0 }
  0x69   : > { %p1737_p8 = pnand %p1736_p6, %p1735_p5  ;;  %p1741_p2 = scmp.lt.u32.totalorder %s1739_s24, %s1734_s7 }
  0x6a   : > { %p1743_p3 = scmp.lt.u32.totalorder %s1734_s7, %s2124_s18 }
  0x6b   : > { %p1738_p10 = pneg %p1737_p8  ;;  %p1742_p1 = por %p1741_p2, %p1740_p12 }
  0x6d   : > { %p1744_p7 = por %p1743_p3, %p1742_p1 }
  0x6f   : > { %p1745_p13 = pnand %p1744_p7, %p1738_p10 }
  0x71   : > { %1748 = shalt.err (!%p1745_p13)
}
  0x72   : > { %s1749_s27 = scalar_lea.vmem %s2142_s9, 256  ;;  %s1896_s21 = smov [#allocation4]  }
  0x73   : > { %p1750_p9 = scmp.ne.s32.totalorder %s2142_s9, %s1749_s27  ;;  %s1754_s6 = sshll.u32 %s1896_s21, 4  ;;  %s1755_s6 = int_to_ptr.vmem [resolvable:$false] %s1754_s6 }
  0x74   : > { %s1756_s8 = scalar_lea.vmem %s1755_s6, 512  ;;  %p1757_p5 = scmp.lt.s32.totalorder %s2142_s9, %s1755_s6 }
  0x75   : > { %p1752_p11 = pnand %p1750_p9, %p1736_p6  ;;  %p1758_p8 = scmp.lt.s32.totalorder %s1756_s8, %s1749_s27 }
  0x77   : > { %p1753_p0 = pneg %p1752_p11  ;;  %p1759_p12 = por %p1758_p8, %p1757_p5 }
  0x79   : > { %p1760_p2 = pnand %p1759_p12, %p1753_p0 }
  0x7b   : > { %1763 = shalt.err (!%p1760_p2)
}
  0x7c   : > { %s2411_s7 = smov 4   ;;  %s2412_s1 = smov 64  }
  0x7d   : > { %1505 = dma.hbm_to_vmem [thread:$0]  (!%p2138_p4), %s2124_s18, 256, %s2142_s9, %s2144_s13, %s2412_s1, %s2412_s1, %s2411_s7  }
  0x7e   : > { %p2413_p6 = scmp.ne.s32.totalorder %s2403_s19, 0 }
  0x7f   : > { %s297_s17 = sand.u32 (!%p2413_p6), 1, %s1866_s28   ;;  %p2414_p10 = scmp.ne.s32.totalorder (!%p2413_p6), %s2398_s16, 0 }
  0x80   : > { %295 = sbr.rel (%p2413_p6) target bundleno = 2010 (0x7da), region = 48  ;;  %s1331_s24 = sshll.u32 (!%p2413_p6), %s297_s17, 4 }
  0x81   : > { %s298_s20 = scalar_lea.sflag (!%p2413_p6), [#allocation5], %s297_s17  ;;  %s2178_s23 = scalar_lea.vmem (!%p2413_p6), [#allocation4], %s1331_s24 }
  0x87   : > { %1837 = dma.done.wait (%p2414_p10), %s298_s20, 256  }
  0x88   : > { %1839 = vsyncadd (%p2414_p10), %s298_s20, 4294967040  ;;  %p2415_p1 = scmp.ne.s32.totalorder %s2397_s14, 0 }
  0x8a   : > { %1841 = dma.done.wait (%p2415_p1), [#allocation8], 512  }
  0x8b   : > { %1843 = vsyncadd (%p2415_p1), [#allocation8], 4294966784  ;;  %s337_s9 = sand.u32 1, %s1854_s25   ;;  %p1335_p4 = scmp.ne.s32.totalorder %s1874_s30, 0 }
  0x8c   : > { %s1334_s19 = sshll.u32 %s337_s9, 4  ;;  %v1622_v0 = vld [vmem:[#allocation9] sm:$0xff] (!%p1335_p4)   ;;  %vm383_vm0 = vcmask (!%p1335_p4), 261120   ;;  %v1623_v1 = vld [vmem:[#allocation9 + $0x8] sm:$0xff] (!%p1335_p4)   ;;  %s1897_s15 = smov (!%p1335_p4), 88   ;;  %vm485_vm1 = vcmask (!%p1335_p4), 64512  }
  0x8d   : > { %s2191_s18 = scalar_lea.vmem [#allocation10], %s1334_s19  ;;  %345 = sbr.rel (%p1335_p4) target bundleno = 553 (0x229), region = 64  ;;  %1403 = vmatprep.subr.bf16.mxu0 (!%p1335_p4), %v1622_v0  ;;  %v1624_v2 = vld [vmem:[%s2178_s23] sm:$0xff] (!%p1335_p4)   ;;  %v1625_v3 = vld [vmem:[%s2178_s23 + $0x8] sm:$0xff] (!%p1335_p4)   ;;  %vm475_vm2 = vcmask (!%p1335_p4), 257024  }
  0x8e   : > { %1404 = vmatpush3.bf16.msra.mxu0 (!%p1335_p4), %v1622_v0  ;;  %1407 = vmatprep.mubr.msk.bf16.mxu0 (!%p1335_p4), %vm383_vm0, %v1624_v2  ;;  %v1336_v5 = vld [vmem:[%s2372_s4] ss:$0 sm:$0xff] (!%p1335_p4)  ;;  %s1898_s13 = smov (!%p1335_p4), 96   ;;  %s1899_s27 = smov (!%p1335_p4), 80  }
  0x8f   : > { %1405 = vmatprep.subr.bf16.mxu0 (!%p1335_p4), %v1623_v1  ;;  %s1900_s21 = smov (!%p1335_p4), 72  }
  0x92   : > { %1406 = vmatpush3.bf16.msra.mxu0 (!%p1335_p4), %v1623_v1 }
  0x95   : > { %1408 = vmatmul.mubr.msk.bf16.vlgmr.msra.gmra.mrb[0].mxu0 %vm383_vm0, %v1625_v3 }
 0x168   : > { %v1409_v4 = vpop.f32.mrb[0].mxu0 }
 0x169   : > { %v424_v6 = vpop.f32.mrb[1].mxu0  ;;  %v433_v8 = vadd.f32 %v1409_v4, %v1336_v5 }
 0x16a   : > { %v1410_v7 = vpop.f32.mrb[2].mxu0  ;;  %v425_v11 = vadd.f32 %v1336_v5, %v424_v6 }
 0x16b   : > { %v436_v9 = vadd.f32 %v1410_v7, %v1336_v5  ;;  %v427_v10 = vpop.f32.mrb[3].mxu0 }
 0x16c   : > { %v428_v12 = vadd.f32 %v1336_v5, %v427_v10 }
 0x16d   : > { %v474_v13 = vpack.c.bf16 %v436_v9, %v433_v8 }
 0x16e   : > { %v473_v14 = vpack.c.bf16 %v428_v12, %v425_v11 }
 0x16f   : > { %496 = vrot.lane.b32.xlu1 %v474_v13, %s1897_s15  ;;  %481 = vrot.lane.b32.xlu0 %v474_v13, %s1898_s13 }
 0x173   : > { %507 = vrot.lane.b32.xlu1 %v474_v13, %s1899_s27  ;;  %479 = vrot.lane.b32.xlu0 %v473_v14, %s1898_s13 }
 0x177   : > { %494 = vrot.lane.b32.xlu1 %v473_v14, %s1897_s15  ;;  %505 = vrot.lane.b32.xlu0 %v473_v14, %s1899_s27 }
 0x17b   : > { %522 = vrot.lane.b32.xlu1 %v474_v13, %s1900_s21  ;;  %520 = vrot.lane.b32.xlu0 %v473_v14, %s1900_s21 }
 0x199   : > { %439 = vxpose.xlu0.b32.start [1/4] (short) (narrow) %v425_v11, 32 }
 0x19d   : > { %440 = vxpose.xlu0.b32.cont [2/4] (short) (narrow) %v428_v12, 32 }
 0x1a1   : > { %441 = vxpose.xlu0.b32.cont [3/4] (short) (narrow) %v433_v8, 32 }
 0x1a5   : > { %442 = vxpose.xlu0.b32.end [4/4] (short) (narrow) %v436_v9, 32 }
 0x1e1   : > { %v497_v15 = vpop.permute.xlu1 %496  ;;  %v482_v16 = vpop.permute.xlu0 %481 }
 0x1e2   : > { %502 = vst.msk [vmem:[#allocation3 + $0x18] sm:$0xff] %vm485_vm1, %v497_v15  ;;  %487 = vst.msk [vmem:[#allocation3 + $0x8] sm:$0xff] %vm485_vm1, %v482_v16 }
 0x1e5   : > { %v508_v17 = vpop.permute.xlu1 %507  ;;  %v480_v18 = vpop.permute.xlu0 %479 }
 0x1e6   : > { %513 = vst.msk [vmem:[#allocation3 + $0x28] sm:$0xff] %vm485_vm1, %v508_v17  ;;  %486 = vst.msk [vmem:[#allocation3] sm:$0xff] %vm485_vm1, %v480_v18 }
 0x1e9   : > { %v495_v19 = vpop.permute.xlu1 %494  ;;  %v506_v20 = vpop.permute.xlu0 %505 }
 0x1ea   : > { %501 = vst.msk [vmem:[#allocation3 + $0x10] sm:$0xff] %vm485_vm1, %v495_v19  ;;  %512 = vst.msk [vmem:[#allocation3 + $0x20] sm:$0xff] %vm485_vm1, %v506_v20 }
 0x1ed   : > { %v523_v21 = vpop.permute.xlu1 %522  ;;  %v521_v22 = vpop.permute.xlu0 %520 }
 0x1ee   : > { %528 = vst.msk [vmem:[#allocation3 + $0x38] sm:$0xff] %vm485_vm1, %v523_v21  ;;  %527 = vst.msk [vmem:[#allocation3 + $0x30] sm:$0xff] %vm485_vm1, %v521_v22 }
 0x219   : > { %v455_v23 = vpop.trf.xlu0 }
 0x21d   : > { %v456_v24 = vpop.trf.xlu0 }
 0x21e   : > { %v471_v25 = vpack.c.bf16 %v456_v24, %v455_v23  ;;  %v1371_v26 = vpack.c.bf16 %v456_v24, %v456_v24 }
 0x220   : > { %476 = vst.msk [vmem:[#allocation2] sm:$0xf] %vm475_vm2, %v471_v25  ;;  %493 = vst.msk [vmem:[#allocation2 + $0x4] sm:$0xf] %vm475_vm2, %v1371_v26 }
 0x221   : > { %v457_v27 = vpop.trf.xlu0 }
 0x225   : > { %v458_v28 = vpop.trf.xlu0 }
 0x226   : > { %v472_v29 = vpack.c.bf16 %v458_v28, %v457_v27  ;;  %v1372_v30 = vpack.c.bf16 %v458_v28, %v458_v28 }
 0x228   : > { %504 = vst.msk [vmem:[#allocation2 + $0x8] sm:$0xf] %vm475_vm2, %v472_v29  ;;  %519 = vst.msk [vmem:[#allocation2 + $0xc] sm:$0xf] %vm475_vm2, %v1372_v30 }
 0x229 PF: > { %v1641_v31 = vld [vmem:[#allocation7] sm:$0xff]   ;;  %v1901_v32 = vmov 0.0   ;;  %v1642_v33 = vld [vmem:[#allocation7 + $0x8] sm:$0xff]   ;;  %vm1902_vm3 = vmmov 0   ;;  %s1345_s6 = sshll.u32 %s1874_s30, 4  ;;  %vm564_vm4 = vcmask 261120  }
 0x22a   : > { %1411 = vmatprep.subr.bf16.mxu0 %v1901_v32  ;;  %1419 = vmatprep.subr.bf16.mxu1 %v1901_v32  ;;  %s530_s8 = sshra.s32 %s1345_s6, 3  ;;  %v612_v35 = vld [vmem:[#allocation2] sm:$0xf]  ;;  %vm617_vm5 = vcmask 1043456   ;;  %v732_v37 = vld [vmem:[#allocation2 + $0x4] sm:$0xf] }
 0x22b   : > { %1412 = vmatpush3.bf16.msra.mxu0 %v1641_v31  ;;  %1415 = vmatprep.mubr.msk.bf16.mxu0 %vm1902_vm3, %v1901_v32  ;;  %s1346_s7 = sshll.u32 %s530_s8, 2  ;;  %v619_v36 = vsel %vm617_vm5, %v612_v35, 0  ;;  %v740_v38 = vsel %vm617_vm5, %v732_v37, 0  ;;  %v1347_v39 = vld [vmem:[%s2370_s2] ss:$0 sm:$0xff]  ;;  %vm613_vm6 = vcmask 64512  }
 0x22c   : > { %1413 = vmatprep.subr.bf16.mxu0 %v1901_v32  ;;  %1421 = vmatprep.mubr.msk.bf16.mxu1 %vm1902_vm3, %v1901_v32  ;;  %s533_s1 = scalar_lea.vmem %s2178_s23, %s1346_s7 [#allocation4]  ;;  %s1903_s20 = smov 104   ;;  %v685_v26 = vld [vmem:[#allocation3] sm:$0xff]  ;;  %v686_v27 = vld [vmem:[#allocation3 + $0x8] sm:$0xff]  ;;  %vm1121_vm7 = vcmask 130048   ;;  %vm1124_vm8 = vcmask 195584  }
 0x22d   : > { %v1643_v34 = vld [vmem:[%s533_s1] sm:$0xff]   ;;  %1420 = vmatpush3.bf16.msra.mxu1 %v619_v36  ;;  %s1904_s23 = smov 120   ;;  %s1905_s19 = smov 112  }
 0x22e   : > { %1425 = vmatprep.subr.bf16.mxu1 %v1901_v32  ;;  %s1906_s15 = smov 8   ;;  %s1907_s21 = smov 16  }
 0x22f   : > { %1414 = vmatpush3.bf16.msra.mxu0 %v1642_v33  ;;  %v854_v49 = vld [vmem:[#allocation2 + $0x8] sm:$0xf]  ;;  %v975_v52 = vld [vmem:[#allocation2 + $0xc] sm:$0xf]  ;;  %s1908_s6 = smov 24   ;;  %s2416_s8 = sld [smem:[#allocation15_spill]] }
 0x230   : > { %1433 = vmatprep.subr.bf16.mxu0 %v1901_v32  ;;  %v861_v50 = vsel %vm617_vm5, %v854_v49, 0  ;;  %v982_v53 = vsel %vm617_vm5, %v975_v52, 0  ;;  %s1365_s7 = sshll.u32 %s1874_s30, 1  ;;  %s1213_s16 = sshll.u32 %s2191_s18, 4  ;;  %s2300_s16 = int_to_ptr.vmem [resolvable:$true] %s1213_s16 }
 0x231   : > { %s2306_s30 = scalar_lea.sflag [#allocation6], %s337_s9 }
 0x232   : > { %1416 = vmatmul.mubr.msk.bf16.vlgmr.msra.gmra.mrb[0].mxu0 %vm564_vm4, %v1643_v34 }
 0x233   : > { %1435 = vmatprep.mubr.msk.bf16.mxu0 %vm1902_vm3, %v1901_v32  ;;  %1434 = vmatpush3.bf16.msra.mxu0 %v740_v38 }
 0x234   : > { %1447 = vmatprep.subr.bf16.mxu0 %v1901_v32 }
 0x235   : > { %s1366_s1 = sshll.u32 %s2416_s8, 2  ;;  %s1764_s8 = scalar_lea.vmem %s2300_s16, 256 }
 0x236   : > { %s1210_s17 = sadd.s32 %s1366_s1, %s1365_s7  ;;  %p1765_p3 = scmp.ne.s32.totalorder %s2300_s16, %s1764_s8 }
 0x237   : > { %s1367_s14 = sshll.u32 %s1210_s17, 7  ;;  %s1909_s7 = smov [#allocation10]  }
 0x238   : > { %s1768_s1 = sshll.u32 %s1909_s7, 4  ;;  %s1769_s1 = int_to_ptr.vmem [resolvable:$false] %s1768_s1 }
 0x239   : > { %s1770_s17 = scalar_lea.vmem %s1769_s1, 512  ;;  %p1771_p11 = scmp.lt.s32.totalorder %s2300_s16, %s1769_s1 }
 0x23a   : > { %p1772_p0 = scmp.lt.s32.totalorder %s1770_s17, %s1764_s8 }
 0x23c   : > { %p1773_p5 = por %p1772_p0, %p1771_p11 }
 0x305   : > { %v602_v40 = vpop.f32.mrb[0].mxu0 }
 0x306   : > { %v603_v41 = vadd.f32 %v1347_v39, %v602_v40  ;;  %v1417_v42 = vpop.f32.mrb[1].mxu0 }
 0x307   : > { %v605_v43 = vpop.f32.mrb[2].mxu0 }
 0x308   : > { %v606_v44 = vadd.f32 %v1347_v39, %v605_v43  ;;  %v1418_v45 = vpop.f32.mrb[3].mxu0  ;;  %v609_v46 = vmul.f32 0.35355338, %v603_v41 }
 0x30a   : > { %v610_v47 = vmul.f32 0.35355338, %v606_v44 }
 0x30c   : > { %v611_v48 = vpack.c.bf16 %v610_v47, %v609_v46 }
 0x30e   : > { %976 = vrot.lane.b32.xlu1 %v611_v48, %s1903_s20  ;;  %734 = vrot.lane.b32.xlu0 %v611_v48, %s1904_s23  ;;  %s2417_s23 = sld [smem:[#allocation22_spill]] }
 0x30f   : > { %1422 = vmatmul.mubr.msk.bf16.vlgmr.msra.gmra.mrb[0].mxu1 %vm613_vm6, %v611_v48 }
 0x310   : > { %1429 = vmatprep.mubr.msk.bf16.mxu1 %vm1902_vm3, %v1901_v32  ;;  %1426 = vmatpush3.bf16.msra.mxu1 %v685_v26 }
 0x311   : > { %1427 = vmatprep.subr.bf16.mxu1 %v1901_v32 }
 0x312   : > { %855 = vrot.lane.b32.xlu0 %v611_v48, %s1905_s19  ;;  %s2418_s19 = sld [smem:[#allocation17_spill]] }
 0x314   : > { %1428 = vmatpush3.bf16.msra.mxu1 %v686_v27 }
 0x315   : > { %1439 = vmatprep.subr.bf16.mxu1 %v1901_v32 }
 0x318   : > { %p2420_p7 = scmp.ne.s32.totalorder %s2418_s19, 0 }
 0x31a   : > { %p1766_p13 = pnand %p1765_p3, %p2420_p7 }
 0x31c   : > { %p1767_p9 = pneg %p1766_p13 }
 0x31e   : > { %p1774_p8 = pnand %p1773_p5, %p1767_p9 }
 0x380   : > { %v735_v51 = vpop.permute.xlu0 %734  ;;  %v977_v55 = vpop.permute.xlu1 %976 }
 0x381   : > { %1436 = vmatmul.mubr.msk.bf16.vlgmr.msra.gmra.mrb[4].mxu0 %vm613_vm6, %v735_v51 }
 0x382   : > { %1448 = vmatpush3.bf16.msra.mxu0 %v861_v50  ;;  %1449 = vmatprep.mubr.msk.bf16.mxu0 %vm1902_vm3, %v1901_v32 }
 0x383   : > { %1461 = vmatprep.subr.bf16.mxu0 %v1901_v32 }
 0x384   : > { %v856_v54 = vpop.permute.xlu0 %855 }
 0x389   : > { %1450 = vmatmul.mubr.msk.bf16.vlgmr.msra.gmra.mrb[8].mxu0 %vm613_vm6, %v856_v54 }
 0x38a   : > { %1462 = vmatpush3.bf16.msra.mxu0 %v982_v53  ;;  %1463 = vmatprep.mubr.msk.bf16.mxu0 %vm1902_vm3, %v1901_v32 }
 0x38b   : > { %1475 = vmatprep.subr.bf16.mxu0 %v1901_v32 }
 0x391   : > { %1464 = vmatmul.mubr.msk.bf16.vlgmr.msra.gmra.mrb[12].mxu0 %vm613_vm6, %v977_v55 }
 0x392   : > { %1479 = vmatprep.mubr.msk.bf16.mxu0 %vm1902_vm3, %v1901_v32 }
 0x3e2   : > { %v655_v56 = vpop.f32.mrb[0].mxu1 }
 0x3e3   : > { %v1423_v57 = vpop.f32.mrb[1].mxu1  ;;  %v662_v58 = vsel %vm564_vm4, %v655_v56, -inf }
 0x3e4   : > { %663 = vmax.xlane.f32.xlu1 %v662_v58  ;;  %v658_v59 = vpop.f32.mrb[2].mxu1 }
 0x3e5   : > { %v1424_v60 = vpop.f32.mrb[3].mxu1  ;;  %v665_v61 = vsel %vm564_vm4, %v658_v59, -inf }
 0x3e6   : > { %666 = vmax.xlane.f32.xlu0 %v665_v61 }
 0x454   : > { %v776_v62 = vpop.f32.mrb[4].mxu0 }
 0x455   : > { %v1437_v63 = vpop.f32.mrb[5].mxu0  ;;  %v783_v0 = vsel %vm564_vm4, %v776_v62, -inf }
 0x456   : > { %784 = vmax.xlane.f32.xlu0 %v783_v0  ;;  %v779_v1 = vpop.f32.mrb[6].mxu0 }
 0x457   : > { %v1438_v2 = vpop.f32.mrb[7].mxu0  ;;  %v786_v3 = vsel %vm564_vm4, %v779_v1, -inf }
 0x458   : > { %787 = vmax.xlane.f32.xlu1 %v786_v3  ;;  %v807_v2 = vld [vmem:[#allocation3 + $0x10] sm:$0xff]  ;;  %v808_v3 = vld [vmem:[#allocation3 + $0x18] sm:$0xff] }
 0x45c   : > { %v897_v4 = vpop.f32.mrb[8].mxu0 }
 0x45d   : > { %v1451_v5 = vpop.f32.mrb[9].mxu0  ;;  %v904_v6 = vsel %vm564_vm4, %v897_v4, -inf }
 0x45e   : > { %905 = vmax.xlane.f32.xlu0 %v904_v6  ;;  %v900_v7 = vpop.f32.mrb[10].mxu0 }
 0x45f   : > { %v1452_v8 = vpop.f32.mrb[11].mxu0  ;;  %v907_v9 = vsel %vm564_vm4, %v900_v7, -inf }
 0x460   : > { %908 = vmax.xlane.f32.xlu1 %v907_v9 }
 0x464   : > { %v1018_v10 = vpop.f32.mrb[12].mxu0 }
 0x465   : > { %v1465_v11 = vpop.f32.mrb[13].mxu0  ;;  %v1025_v12 = vsel %vm564_vm4, %v1018_v10, -inf }
 0x466   : > { %1026 = vmax.xlane.f32.xlu0 %v1025_v12  ;;  %v1021_v13 = vpop.f32.mrb[14].mxu0 }
 0x467   : > { %v1466_v14 = vpop.f32.mrb[15].mxu0  ;;  %v1028_v15 = vsel %vm564_vm4, %v1021_v13, -inf }
 0x468   : > { %1029 = vmax.xlane.f32.xlu1 %v1028_v15  ;;  %v928_v14 = vld [vmem:[#allocation3 + $0x20] sm:$0xff] }
 0x471   : > { %v664_v16 = vpop.xlane.xlu1 %663 }
 0x472   : > { %v668_v17 = vsub.f32 %v655_v56, %v664_v16 }
 0x473   : > { %v667_v18 = vpop.xlane.xlu0 %666 }
 0x474   : > { %v670_v19 = vmul.f32 1.442695, %v668_v17  ;;  %v669_v20 = vsub.f32 %v658_v59, %v667_v18  ;;  %v929_v17 = vld [vmem:[#allocation3 + $0x28] sm:$0xff] }
 0x476   : > { %1646 = vpow2.f32 %v670_v19  ;;  %v672_v21 = vmul.f32 1.442695, %v669_v20 }
 0x478   : > { %1648 = vpow2.f32 %v672_v21 }
 0x480   : > { %v1647_v22 = vpop.eup %1646 }
 0x481   : > { %v674_v23 = vsel %vm564_vm4, %v1647_v22, 0.0 }
 0x482   : > { %v1649_v24 = vpop.eup %1648  ;;  %675 = vadd.xlane.f32.xlu0 %v674_v23 }
 0x483   : > { %v677_v25 = vsel %vm564_vm4, %v1649_v24, 0.0 }
 0x484   : > { %678 = vadd.xlane.f32.xlu1 %v677_v25 }
 0x4e3   : > { %v785_v28 = vpop.xlane.xlu0 %784 }
 0x4e4   : > { %v789_v29 = vsub.f32 %v776_v62, %v785_v28 }
 0x4e5   : > { %v788_v30 = vpop.xlane.xlu1 %787 }
 0x4e6   : > { %v791_v31 = vmul.f32 1.442695, %v789_v29  ;;  %v790_v33 = vsub.f32 %v779_v1, %v788_v30 }
 0x4e8   : > { %1650 = vpow2.f32 %v791_v31  ;;  %v793_v34 = vmul.f32 1.442695, %v790_v33 }
 0x4ea   : > { %1652 = vpow2.f32 %v793_v34 }
 0x4eb   : > { %v906_v35 = vpop.xlane.xlu0 %905 }
 0x4ec   : > { %v910_v36 = vsub.f32 %v897_v4, %v906_v35 }
 0x4ed   : > { %v909_v37 = vpop.xlane.xlu1 %908 }
 0x4ee   : > { %v912_v38 = vmul.f32 1.442695, %v910_v36  ;;  %v911_v39 = vsub.f32 %v900_v7, %v909_v37  ;;  %v1644_v37 = vld [vmem:[%s2373_s5] sm:$0xff]  }
 0x4ef   : > { %1476 = vmatpush3.bf16.msra.mxu0 %v1644_v37 }
 0x4f0   : > { %1654 = vpow2.f32 %v912_v38  ;;  %v914_v40 = vmul.f32 1.442695, %v911_v39  ;;  %1477 = vmatprep.subr.bf16.mxu0 %v1901_v32 }
 0x4f2   : > { %v1651_v41 = vpop.eup %1650  ;;  %1656 = vpow2.f32 %v914_v40 }
 0x4f3   : > { %v1027_v42 = vpop.xlane.xlu0 %1026  ;;  %v795_v43 = vsel %vm564_vm4, %v1651_v41, 0.0 }
 0x4f4   : > { %v1653_v44 = vpop.eup %1652  ;;  %v1031_v45 = vsub.f32 %v1018_v10, %v1027_v42  ;;  %796 = vadd.xlane.f32.xlu0 %v795_v43  ;;  %v1645_v42 = vld [vmem:[%s2373_s5 + $0x8] sm:$0xff]  }
 0x4f5   : > { %v1030_v46 = vpop.xlane.xlu1 %1029  ;;  %v798_v47 = vsel %vm564_vm4, %v1653_v44, 0.0  ;;  %1478 = vmatpush3.bf16.msra.mxu0 %v1645_v42 }
 0x4f6   : > { %v1033_v48 = vmul.f32 1.442695, %v1031_v45  ;;  %v1032_v49 = vsub.f32 %v1021_v13, %v1030_v46  ;;  %799 = vadd.xlane.f32.xlu1 %v798_v47 }
 0x4f8   : > { %1658 = vpow2.f32 %v1033_v48  ;;  %v1035_v50 = vmul.f32 1.442695, %v1032_v49 }
 0x4fa   : > { %v1655_v51 = vpop.eup %1654  ;;  %1660 = vpow2.f32 %v1035_v50 }
 0x4fb   : > { %v916_v52 = vsel %vm564_vm4, %v1655_v51, 0.0 }
 0x4fc   : > { %v1657_v53 = vpop.eup %1656  ;;  %917 = vadd.xlane.f32.xlu0 %v916_v52 }
 0x4fd   : > { %v919_v54 = vsel %vm564_vm4, %v1657_v53, 0.0 }
 0x4fe   : > { %920 = vadd.xlane.f32.xlu1 %v919_v54 }
 0x502   : > { %v1659_v55 = vpop.eup %1658 }
 0x503   : > { %v1037_v56 = vsel %vm564_vm4, %v1659_v55, 0.0 }
 0x504   : > { %v1661_v57 = vpop.eup %1660  ;;  %1038 = vadd.xlane.f32.xlu0 %v1037_v56 }
 0x505   : > { %v1040_v58 = vsel %vm564_vm4, %v1661_v57, 0.0 }
 0x506   : > { %1041 = vadd.xlane.f32.xlu1 %v1040_v58 }
 0x50f   : > { %v676_v59 = vpop.xlane.xlu0 %675 }
 0x510   : > { %1662 = vrcp.f32 %v676_v59 }
 0x511   : > { %v679_v60 = vpop.xlane.xlu1 %678 }
 0x512   : > { %1664 = vrcp.f32 %v679_v60 }
 0x51a   : > { %v1663_v61 = vpop.eup %1662 }
 0x51b   : > { %v682_v63 = vmul.f32 %v1663_v61, %v1647_v22  ;;  %v1049_v22 = vld [vmem:[#allocation3 + $0x30] sm:$0xff] }
 0x51c   : > { %v1665_v62 = vpop.eup %1664 }
 0x51d   : > { %v683_v0 = vmul.f32 %v1665_v62, %v1649_v24  ;;  %v1050_v24 = vld [vmem:[#allocation3 + $0x38] sm:$0xff] }
 0x51f   : > { %v684_v1 = vpack.c.bf16 %v683_v0, %v682_v63 }
 0x521   : > { %1430 = vmatmul.mubr.msk.bf16.vlgmr.msra.gmra.mrb[4].mxu1 %vm564_vm4, %v684_v1 }
 0x522   : > { %1440 = vmatpush3.bf16.msra.mxu1 %v807_v2  ;;  %1443 = vmatprep.mubr.msk.bf16.mxu1 %vm1902_vm3, %v1901_v32  ;;  %v1360_v2 = vld [vmem:[%s2417_s23] ss:$0 sm:$0xff] }
 0x523   : > { %1441 = vmatprep.subr.bf16.mxu1 %v1901_v32 }
 0x526   : > { %1442 = vmatpush3.bf16.msra.mxu1 %v808_v3 }
 0x527   : > { %1453 = vmatprep.subr.bf16.mxu1 %v1901_v32 }
 0x581   : > { %v797_v4 = vpop.xlane.xlu0 %796 }
 0x582   : > { %1666 = vrcp.f32 %v797_v4 }
 0x583   : > { %v800_v5 = vpop.xlane.xlu1 %799 }
 0x584   : > { %1668 = vrcp.f32 %v800_v5 }
 0x589   : > { %v918_v6 = vpop.xlane.xlu0 %917 }
 0x58a   : > { %1670 = vrcp.f32 %v918_v6 }
 0x58b   : > { %v921_v7 = vpop.xlane.xlu1 %920 }
 0x58c   : > { %v1667_v8 = vpop.eup %1666  ;;  %1672 = vrcp.f32 %v921_v7 }
 0x58d   : > { %v803_v10 = vmul.f32 %v1667_v8, %v1651_v41 }
 0x58e   : > { %v1669_v9 = vpop.eup %1668 }
 0x58f   : > { %v804_v11 = vmul.f32 %v1669_v9, %v1653_v44 }
 0x591   : > { %v1039_v12 = vpop.xlane.xlu0 %1038  ;;  %v805_v13 = vpack.c.bf16 %v804_v11, %v803_v10 }
 0x592   : > { %1674 = vrcp.f32 %v1039_v12 }
 0x593   : > { %1444 = vmatmul.mubr.msk.bf16.vlgmr.msra.gmra.mrb[8].mxu1 %vm564_vm4, %v805_v13  ;;  %v1042_v15 = vpop.xlane.xlu1 %1041 }
 0x594   : > { %v1671_v16 = vpop.eup %1670  ;;  %1454 = vmatpush3.bf16.msra.mxu1 %v928_v14  ;;  %1676 = vrcp.f32 %v1042_v15  ;;  %1457 = vmatprep.mubr.msk.bf16.mxu1 %vm1902_vm3, %v1901_v32 }
 0x595   : > { %1455 = vmatprep.subr.bf16.mxu1 %v1901_v32  ;;  %v924_v19 = vmul.f32 %v1671_v16, %v1655_v51 }
 0x596   : > { %v1673_v18 = vpop.eup %1672 }
 0x597   : > { %v925_v20 = vmul.f32 %v1673_v18, %v1657_v53 }
 0x598   : > { %1456 = vmatpush3.bf16.msra.mxu1 %v929_v17 }
 0x599   : > { %1467 = vmatprep.subr.bf16.mxu1 %v1901_v32  ;;  %v926_v21 = vpack.c.bf16 %v925_v20, %v924_v19 }
 0x59b   : > { %1458 = vmatmul.mubr.msk.bf16.vlgmr.msra.gmra.mrb[12].mxu1 %vm564_vm4, %v926_v21 }
 0x59c   : > { %v1675_v23 = vpop.eup %1674  ;;  %1468 = vmatpush3.bf16.msra.mxu1 %v1049_v22  ;;  %1471 = vmatprep.mubr.msk.bf16.mxu1 %vm1902_vm3, %v1901_v32 }
 0x59d   : > { %1469 = vmatprep.subr.bf16.mxu1 %v1901_v32  ;;  %v1045_v26 = vmul.f32 %v1675_v23, %v1659_v55 }
 0x59e   : > { %v1677_v25 = vpop.eup %1676 }
 0x59f   : > { %v1046_v27 = vmul.f32 %v1677_v25, %v1661_v57 }
 0x5a0   : > { %1470 = vmatpush3.bf16.msra.mxu1 %v1050_v24 }
 0x5a1   : > { %v1047_v28 = vpack.c.bf16 %v1046_v27, %v1045_v26 }
 0x5a3   : > { %1472 = vmatmul.mubr.msk.bf16.vlgmr.msra.gmra.mrb[16].mxu1 %vm564_vm4, %v1047_v28 }
 0x5f4   : > { %v724_v29 = vpop.f32.mrb[4].mxu1 }
 0x5f5   : > { %v1431_v30 = vpop.f32.mrb[5].mxu1 }
 0x5f6   : > { %v727_v31 = vpop.f32.mrb[6].mxu1 }
 0x5f7   : > { %v1432_v33 = vpop.f32.mrb[7].mxu1 }
 0x666   : > { %v846_v34 = vpop.f32.mrb[8].mxu1 }
 0x667   : > { %v1445_v35 = vpop.f32.mrb[9].mxu1 }
 0x668   : > { %v849_v36 = vpop.f32.mrb[10].mxu1 }
 0x669   : > { %v1626_v38 = vpack.i.bf16 %v849_v36, %v846_v34  ;;  %v1446_v39 = vpop.f32.mrb[11].mxu1 }
 0x66b   : > { %1627 = vrot.lane.b32.xlu0 %v1626_v38, %s1906_s15 }
 0x66e   : > { %v967_v40 = vpop.f32.mrb[12].mxu1 }
 0x66f   : > { %v1459_v41 = vpop.f32.mrb[13].mxu1 }
 0x670   : > { %v970_v43 = vpop.f32.mrb[14].mxu1 }
 0x671   : > { %v1631_v44 = vpack.i.bf16 %v970_v43, %v967_v40  ;;  %v1460_v45 = vpop.f32.mrb[15].mxu1 }
 0x673   : > { %1632 = vrot.lane.b32.xlu1 %v1631_v44, %s1907_s21  ;;  %s2419_s21 = sld [smem:[#allocation23_spill]] }
 0x676   : > { %v1088_v46 = vpop.f32.mrb[16].mxu1 }
 0x677   : > { %v1473_v47 = vpop.f32.mrb[17].mxu1 }
 0x678   : > { %v1091_v48 = vpop.f32.mrb[18].mxu1 }
 0x679   : > { %v1636_v49 = vpack.i.bf16 %v1091_v48, %v1088_v46  ;;  %v1474_v50 = vpop.f32.mrb[19].mxu1 }
 0x67b   : > { %1637 = vrot.lane.b32.xlu1 %v1636_v49, %s1908_s6  ;;  %s2296_s6 = scalar_lea.hbm %s2419_s21, %s1367_s14 }
 0x6dd   : > { %v1628_v32 = vpop.permute.xlu0 %1627 }
 0x6de   : > { %v1630_v52 = vunpack.i.h.bf16 %v1628_v32  ;;  %v1629_v53 = vunpack.i.l.bf16 %v1628_v32 }
 0x6e0   : > { %v1120_v57 = vsel %vm613_vm6, %v727_v31, %v1630_v52  ;;  %v1119_v58 = vsel %vm613_vm6, %v724_v29, %v1629_v53 }
 0x6e5   : > { %v1633_v51 = vpop.permute.xlu1 %1632 }
 0x6e6   : > { %v1635_v54 = vunpack.i.h.bf16 %v1633_v51  ;;  %v1634_v55 = vunpack.i.l.bf16 %v1633_v51 }
 0x6e8   : > { %v1123_v61 = vsel %vm1121_vm7, %v1120_v57, %v1635_v54  ;;  %v1122_v62 = vsel %vm1121_vm7, %v1119_v58, %v1634_v55 }
 0x6ed   : > { %v1638_v56 = vpop.permute.xlu1 %1637 }
 0x6ee   : > { %v1640_v59 = vunpack.i.h.bf16 %v1638_v56  ;;  %v1639_v60 = vunpack.i.l.bf16 %v1638_v56 }
 0x6f0   : > { %v1125_v63 = vsel %vm1124_vm8, %v1122_v62, %v1639_v60  ;;  %v1126_v0 = vsel %vm1124_vm8, %v1123_v61, %v1640_v59 }
 0x6f1   : > { %v1127_v1 = vpack.c.bf16 %v1126_v0, %v1125_v63 }
 0x6f3   : > { %1480 = vmatmul.mubr.msk.bf16.vlgmr.msra.gmra.mrb[16].mxu0 %vm564_vm4, %v1127_v1 }
 0x7c6   : > { %v1188_v3 = vpop.f32.mrb[16].mxu0 }
 0x7c7   : > { %v1189_v4 = vadd.f32 %v1360_v2, %v1188_v3  ;;  %v1481_v5 = vpop.f32.mrb[17].mxu0 }
 0x7c8   : > { %v1191_v6 = vpop.f32.mrb[18].mxu0 }
 0x7c9   : > { %1195 = vst.msk [vmem:[%s2191_s18] sm:$0xff] %vm564_vm4, %v1189_v4  ;;  %v1192_v7 = vadd.f32 %v1360_v2, %v1191_v6  ;;  %v1482_v8 = vpop.f32.mrb[19].mxu0 }
 0x7cb   : > { %1196 = vst.msk [vmem:[%s2191_s18 + $0x8] sm:$0xff] %vm564_vm4, %v1192_v7 }
 0x7cc   : > { %1777 = shalt.err (!%p1774_p8)
}
 0x7cd   : > { %s1778_s9 = scalar_lea.hbm %s2296_s6, 256  ;;  %s1782_s20 = scalar_lea.hbm %s2419_s21, 1024 }
 0x7ce   : > { %p1779_p12 = scmp.ne.s32.totalorder %s2296_s6, %s1778_s9  ;;  %p1783_p10 = scmp.lt.u32.totalorder %s2296_s6, %s2419_s21 }
 0x7cf   : > { %p1784_p1 = scmp.lt.u32.totalorder %s1782_s20, %s1778_s9  ;;  %p1786_p3 = scmp.lt.u32.totalorder %s1778_s9, %s2296_s6 }
 0x7d0   : > { %p1780_p2 = pnand %p1779_p12, %p2420_p7 }
 0x7d1   : > { %p1785_p4 = por %p1784_p1, %p1783_p10 }
 0x7d2   : > { %p1781_p6 = pneg %p1780_p2 }
 0x7d3   : > { %p1787_p13 = por %p1786_p3, %p1785_p4 }
 0x7d5   : > { %p1788_p9 = pnand %p1787_p13, %p1781_p6 }
 0x7d7   : > { %1791 = shalt.err (!%p1788_p9)
}
 0x7d8   : > { %s1910_s13 = smov 128  }
 0x7d9   : > { %1493 = dma.vmem_to_hbm [thread:$0]  (%p2420_p7), %s2300_s16, 256, %s2296_s6, %s2306_s30, %s1910_s13, %s1910_s13, %s1906_s15  }
 0x7da PF: > { %s2421_s27 = sld [smem:[#allocation14_spill]]  ;;  %s2422_s8 = sld [smem:[#allocation18_spill]] }
 0x7db   : > { %p1515_p11 = scmp.ge.s32.totalorder %s1890_s11, 2 }
 0x7e0   : > { %s1228_s7 = sand.u32 1, %s2421_s27   ;;  %p2423_p0 = scmp.ne.s32.totalorder %s2422_s8, 0 }
 0x7e1   : > { %s1229_s1 = scalar_lea.sflag [#allocation6], %s1228_s7 }
 0x7e2   : > { %p1507_p5 = pnand %p1515_p11, %p2423_p0 }
 0x7e4   : > { %1845 = dma.done.wait (!%p1507_p5), %s1229_s1, 256  }
 0x7e5   : > { %1847 = vsyncadd (!%p1507_p5), %s1229_s1, 4294967040  ;;  %s24_s11 = sadd.s32 1, %s1890_s11   ;;  %s2424_s30 = sld [smem:[#allocation16_spill]] }
 0x7e6   : > { %p21_p8 = scmp.ge.s32.totalorder %s24_s11, 6   ;;  %s2425_s9 = sld [smem:[#allocation19_spill]] }
 0x7e7   : > { %s2426_s24 = smov %s1854_s25  ;;  %s2427_s25 = smov %s1858_s26 }
 0x7e8   : > { %s2428_s26 = smov %s2132_s3  ;;  %s2429_s27 = smov %s1866_s28 }
 0x7e9   : > { %s2430_s28 = smov %s1870_s29  ;;  %s2431_s29 = smov %s2127_s12 }
 0x7ea   : > { %s2432_s8 = smov %s1886_s10  ;;  %s2433_s10 = smov %s2439_s22 }
 0x7eb   :  { %23 = sbr.rel (!%p21_p8) target bundleno = 15 (0xf), region = 118 }
 0x7f2   :  { %1234 = vsyncpa [#allocation5], 1 }
 0x7f3   :  { %1236 = vsyncpa [#allocation5 + $0x1], 1 }
 0x7f4   :  { %1237 = vsyncpa [#allocation8], 1 }
 0x7f5   :  { %1238 = vsyncpa [#allocation6], 1 }
 0x7f6   :  { %1240 = vsyncpa [#allocation6 + $0x1], 1 }

</bundles_post_ra>
